<compile_context>
chip_gen: v7x
topology: tpu7x:2x2x1
jax: 0.10.0
libtpu: 0.0.40
codegen_flags: <defaults>
</compile_context>

<pallas_src>
import functools

import jax
import jax.numpy as jnp
from jax.experimental import pallas as pl
from jax.experimental.pallas import tpu as pltpu


def _round_up(a, m):
    return (a + m - 1) // m * m


def _vmem_limit_bytes():
    """Generation-aware scoped-VMEM request; None -> keep compiler default."""
    try:
        cap = int(pltpu.get_tpu_info().vmem_capacity_bytes)
    except Exception:
        return None
    if cap <= 64 * 1024 * 1024:          # v7x-class: leave headroom
        return 36 * 1024 * 1024
    return 64 * 1024 * 1024              # v5e / v6e: plenty of VMEM


# ----------------------------------------------------------------------------
# Pallas kernel: 3x3 conv as nine slab-window sub-matmuls (f32 accumulation)
#                + bias (+residual)(+ReLU), optional fused 1x1 shortcut conv.
# ----------------------------------------------------------------------------
def _conv_bn_kernel(*refs, taps, sc_tap, relu, has_residual, has_shortcut):
    it = iter(refs)
    x_ref = next(it)                                   # (1, P, L, Cin)   bf16
    w_ref = next(it)                                   # (9, Cin, Coutp)  bf16 (scale-folded)
    b_ref = next(it)                                   # (1, Coutp)       f32
    res_ref = next(it) if has_residual else None       # (1, M, Coutp)    bf16
    scw_ref = next(it) if has_shortcut else None       # (Cin, Coutp)     bf16 (scale-folded)
    scb_ref = next(it) if has_shortcut else None       # (1, Coutp)       f32
    o_ref = next(it)                                   # (1, M, Coutp)    bf16
    sco_ref = next(it) if has_shortcut else None       # (1, M, Coutp)    bf16

    M = o_ref.shape[1]

    # Nine unit-stride window slices of the activation slab, one MXU
    # sub-matmul per tap, accumulated in f32.
    acc = None
    for t, (ph, off) in enumerate(taps):
        xs = x_ref[0, ph, off:off + M, :]              # (M, Cin) bf16
        part = jnp.dot(xs, w_ref[t], preferred_element_type=jnp.float32)
        acc = part if acc is None else acc + part

    out = acc + b_ref[...]                             # folded-BN bias (f32)
    if has_residual:
        out = out + res_ref[0].astype(jnp.float32)
    if relu:
        out = jnp.maximum(out, 0.0)
    o_ref[0] = out.astype(o_ref.dtype)

    if has_shortcut:
        # Fused 1x1 stride-s projection shortcut + BN: it is exactly the
        # centre tap of the same slab (no extra HBM stream).
        ph, off = sc_tap
        xs = x_ref[0, ph, off:off + M, :]
        sacc = jnp.dot(xs, scw_ref[...], preferred_element_type=jnp.float32)
        sco_ref[0] = (sacc + scb_ref[...]).astype(sco_ref.dtype)


# ----------------------------------------------------------------------------
# Wrapper: 3x3 conv (padding=1, no conv bias) with BN scale pre-folded into
#          w_hwio and f32 `bias`; optional residual add, ReLU, and fused
#          1x1 projection shortcut (+ its folded BN).
# ----------------------------------------------------------------------------
def conv_bn(x_nhwc, w_hwio, bias, *, stride, relu, residual=None, shortcut=None):
    N, H, W, Cin = x_nhwc.shape
    Cout = w_hwio.shape[-1]
    assert w_hwio.shape[:3] == (3, 3, Cin)
    assert stride in (1, 2)
    if stride == 2:
        assert H % 2 == 0 and W % 2 == 0, "stride-2 path assumes even H, W"

    Ho, Wo = H // stride, W // stride
    Coutp = _round_up(Cout, 128)                        # lane-dense outputs

    xb = x_nhwc.astype(jnp.bfloat16)
    xp = jnp.pad(xb, ((0, 0), (1, 1), (1, 1), (0, 0)))  # (N, H+2, W+2, Cin)
    Hp, Wp = H + 2, W + 2

    if stride == 1:
        P, Wrow = 1, Wp
        slab = xp.reshape(N, 1, Hp * Wp, Cin)           # free reshape
        taps = [(0, kh * Wp + kw) for kh in range(3) for kw in range(3)]
        sc_tap = (0, Wp + 1)                            # centre tap
    else:
        # 2x2 phase decomposition: phase (rph, cph) holds xpad[2h+rph, 2w+cph].
        Hq, Wq = Hp // 2, Wp // 2
        P, Wrow = 4, Wq
        xq = xp.reshape(N, Hq, 2, Wq, 2, Cin).transpose(0, 2, 4, 1, 3, 5)
        slab = xq.reshape(N, 4, Hq * Wq, Cin)
        taps = [((kh % 2) * 2 + (kw % 2), (kh // 2) * Wq + (kw // 2))
                for kh in range(3) for kw in range(3)]
        sc_tap = (3, 0)                                 # phase (1,1), offset 0

    M = Ho * Wrow                                       # matmul M (incl. junk cols)
    L = _round_up(max(off for _, off in taps) + M, 8)   # slab rows incl. safety pad
    slab = jnp.pad(slab, ((0, 0), (0, 0), (0, L - slab.shape[2]), (0, 0)))

    wt = jnp.pad(w_hwio.reshape(9, Cin, Cout),
                 ((0, 0), (0, 0), (0, Coutp - Cout))).astype(jnp.bfloat16)
    bp = jnp.pad(bias.astype(jnp.float32), (0, Coutp - Cout)).reshape(1, Coutp)

    in_specs = [
        pl.BlockSpec((1, P, L, Cin), lambda n: (n, 0, 0, 0)),   # activations
        pl.BlockSpec((9, Cin, Coutp), lambda n: (0, 0, 0)),     # weights (grid-invariant)
        pl.BlockSpec((1, Coutp), lambda n: (0, 0)),             # bias    (grid-invariant)
    ]
    args = [slab, wt, bp]

    if residual is not None:
        res = residual.astype(jnp.bfloat16)                     # (N, Ho, Wo, Cout)
        res = jnp.pad(res, ((0, 0), (0, 0), (0, Wrow - Wo), (0, Coutp - Cout)))
        res = res.reshape(N, M, Coutp)
        in_specs.append(pl.BlockSpec((1, M, Coutp), lambda n: (n, 0, 0)))
        args.append(res)

    if shortcut is not None:
        scw = jnp.pad(shortcut['w'],
                      ((0, 0), (0, Coutp - Cout))).astype(jnp.bfloat16)
        scb = jnp.pad(shortcut['bias'].astype(jnp.float32),
                      (0, Coutp - Cout)).reshape(1, Coutp)
        in_specs += [pl.BlockSpec((Cin, Coutp), lambda n: (0, 0)),
                     pl.BlockSpec((1, Coutp), lambda n: (0, 0))]
        args += [scw, scb]

    out_block = pl.BlockSpec((1, M, Coutp), lambda n: (n, 0, 0))
    if shortcut is not None:
        out_shape = (jax.ShapeDtypeStruct((N, M, Coutp), jnp.bfloat16),
                     jax.ShapeDtypeStruct((N, M, Coutp), jnp.bfloat16))
        out_specs = (out_block, out_block)
    else:
        out_shape = jax.ShapeDtypeStruct((N, M, Coutp), jnp.bfloat16)
        out_specs = out_block

    kernel = functools.partial(_conv_bn_kernel, taps=taps, sc_tap=sc_tap,
                               relu=relu, has_residual=residual is not None,
                               has_shortcut=shortcut is not None)

    cp_kwargs = dict(dimension_semantics=("parallel",))
    vmem = _vmem_limit_bytes()
    if vmem is not None:
        cp_kwargs["vmem_limit_bytes"] = vmem

    result = pl.pallas_call(
        kernel,
        out_shape=out_shape,
        grid=(N,),
        in_specs=in_specs,
        out_specs=out_specs,
        compiler_params=pltpu.CompilerParams(**cp_kwargs),
    )(*args)

    def unslab(o):   # drop junk columns / padded channels
        return o.reshape(N, Ho, Wrow, Coutp)[:, :, :Wo, :Cout]

    if shortcut is not None:
        return unslab(result[0]), unslab(result[1])
    return unslab(result), None


# ----------------------------------------------------------------------------
# Parameter setup (deterministic, matches nn.Module shapes) + forward
# ----------------------------------------------------------------------------
EXPANSION = 1
BN_EPS = 1e-5


def init_basic_block(key, in_channels, out_channels, stride):
    ks = jax.random.split(key, 15)

    def conv_w(k, cout, cin, ksz):
        fan_in = cin * ksz * ksz
        return jax.random.normal(k, (cout, cin, ksz, ksz), jnp.float32) / jnp.sqrt(fan_in)

    def bn_p(k0, k1, k2, k3, c):
        return dict(gamma=1.0 + 0.1 * jax.random.normal(k0, (c,), jnp.float32),
                    beta=0.1 * jax.random.normal(k1, (c,), jnp.float32),
                    mean=0.1 * jax.random.normal(k2, (c,), jnp.float32),
                    var=jax.random.uniform(k3, (c,), jnp.float32, 0.5, 1.5))

    p = dict(
        stride=stride,
        w1=conv_w(ks[0], out_channels, in_channels, 3),          # OIHW
        bn1=bn_p(ks[1], ks[2], ks[3], ks[4], out_channels),
        w2=conv_w(ks[5], out_channels, out_channels, 3),
        bn2=bn_p(ks[6], ks[7], ks[8], ks[9], out_channels),
    )
    if stride != 1 or in_channels != EXPANSION * out_channels:
        p['ws'] = conv_w(ks[10], EXPANSION * out_channels, in_channels, 1)
        p['bns'] = bn_p(ks[11], ks[12], ks[13], ks[14], EXPANSION * out_channels)
    return p


def _fold_bn(bn):
    scale = bn['gamma'] / jnp.sqrt(bn['var'] + BN_EPS)
    bias = bn['beta'] - bn['mean'] * scale
    return scale, bias


def basic_block_pallas(x_nchw, p):
    stride = p['stride']
    x = jnp.transpose(x_nchw, (0, 2, 3, 1)).astype(jnp.bfloat16)   # NCHW -> NHWC

    def fold_conv(w_oihw, bn):
        scale, bias = _fold_bn(bn)
        w = jnp.transpose(w_oihw, (2, 3, 1, 0))                    # OIHW -> HWIO
        return w * scale, bias                                     # scale folded into w

    w1, b1 = fold_conv(p['w1'], p['bn1'])
    w2, b2 = fold_conv(p['w2'], p['bn2'])

    if 'ws' in p:
        ss, sb = _fold_bn(p['bns'])
        ws = jnp.transpose(p['ws'], (2, 3, 1, 0))[0, 0]            # (Cin, Cout)
        sc_params = dict(w=ws * ss, bias=sb)
        out1, shortcut = conv_bn(x, w1, b1, stride=stride, relu=True,
                                 shortcut=sc_params)
    else:
        out1, _ = conv_bn(x, w1, b1, stride=stride, relu=True)
        # TODO(synk): identity skip path is bf16 (reference adds f32 x);
        # acceptable for inference, documented per review.
        shortcut = x

    out, _ = conv_bn(out1, w2, b2, stride=1, relu=True, residual=shortcut)
    return jnp.transpose(out, (0, 3, 1, 2)).astype(jnp.float32)    # NHWC -> NCHW


# ----------------------------------------------------------------------------
# Pure-JAX reference (for correctness check)
# ----------------------------------------------------------------------------
def basic_block_ref(x, p):
    stride = p['stride']

    def conv(inp, w, s, pad):
        return jax.lax.conv_general_dilated(
            inp, w, (s, s), [(pad, pad), (pad, pad)],
            dimension_numbers=('NCHW', 'OIHW', 'NCHW'))

    def bn(inp, b):
        sh = (1, -1, 1, 1)
        scale = (b['gamma'] / jnp.sqrt(b['var'] + BN_EPS)).reshape(sh)
        return (inp - b['mean'].reshape(sh)) * scale + b['beta'].reshape(sh)

    out = jax.nn.relu(bn(conv(x, p['w1'], stride, 1), p['bn1']))
    out = bn(conv(out, p['w2'], 1, 1), p['bn2'])
    sc = bn(conv(x, p['ws'], stride, 0), p['bns']) if 'ws' in p else x
    return jax.nn.relu(out + sc)


if __name__ == "__main__":
    key = jax.random.PRNGKey(0)
    k_x, k_p, k_x2, k_p2 = jax.random.split(key, 4)

    # Case 1: downsampling block (stride=2, fused 1x1 projection shortcut).
    N, Cin, Cout, H, W, stride = 2, 4, 8, 16, 16, 2
    x = jax.random.normal(k_x, (N, Cin, H, W), jnp.float32)       # NCHW input
    params = init_basic_block(k_p, Cin, Cout, stride)
    y = jax.block_until_ready(basic_block_pallas(x, params))
    y_ref = basic_block_ref(x, params)
    assert y.shape == y_ref.shape == (N, Cout, H // stride, W // stride)
    # bf16 activations/weights (BN scale folded in) with f32 accumulation.
    assert jnp.allclose(y, y_ref, atol=5e-2, rtol=5e-2)

    # Case 2: identity-shortcut block (stride=1, Cin == Cout).
    N2, C2, H2, W2 = 2, 8, 16, 16
    x2 = jax.random.normal(k_x2, (N2, C2, H2, W2), jnp.float32)
    params2 = init_basic_block(k_p2, C2, C2, 1)
    y2 = jax.block_until_ready(basic_block_pallas(x2, params2))
    y2_ref = basic_block_ref(x2, params2)
    assert y2.shape == y2_ref.shape == (N2, C2, H2, W2)
    assert jnp.allclose(y2, y2_ref, atol=5e-2, rtol=5e-2)

    print("KERNEL_OK")
</pallas_src>

<mosaic_0001>
module attributes {stable_mosaic.version = 11 : i64} {
  func.func @_conv_bn_kernel(%arg0: i32, %arg1: memref<1x4x88x4xbf16, #tpu.memory_space<vmem>>, %arg2: memref<9x4x128xbf16, #tpu.memory_space<vmem>>, %arg3: memref<1x128xf32, #tpu.memory_space<vmem>>, %arg4: memref<4x128xbf16, #tpu.memory_space<vmem>>, %arg5: memref<1x128xf32, #tpu.memory_space<vmem>>, %arg6: memref<1x72x128xbf16, #tpu.memory_space<vmem>>, %arg7: memref<1x72x128xbf16, #tpu.memory_space<vmem>>) attributes {dimension_semantics = [#tpu.dimension_semantics<parallel>], iteration_bounds = array<i64: 2>, scalar_prefetch = 0 : i64, scratch_operands = 0 : i64, tpu.core_type = #tpu.core_type<tc>, window_params = [{transform_indices = @transform_0, window_bounds = array<i64: 1, 4, 88, 4>}, {pipeline_mode = #tpu.pipeline_mode<synchronous>, transform_indices = @transform_1, window_bounds = array<i64: 9, 4, 128>}, {pipeline_mode = #tpu.pipeline_mode<synchronous>, transform_indices = @transform_2, window_bounds = array<i64: 1, 128>}, {pipeline_mode = #tpu.pipeline_mode<synchronous>, transform_indices = @transform_3, window_bounds = array<i64: 4, 128>}, {pipeline_mode = #tpu.pipeline_mode<synchronous>, transform_indices = @transform_4, window_bounds = array<i64: 1, 128>}, {transform_indices = @transform_5, window_bounds = array<i64: 1, 72, 128>}, {transform_indices = @transform_6, window_bounds = array<i64: 1, 72, 128>}]} {
    %c0 = arith.constant 0 : index
    %c0_0 = arith.constant 0 : index
    %c0_1 = arith.constant 0 : index
    %c0_2 = arith.constant 0 : index
    %0 = vector.load %arg1[%c0, %c0_0, %c0_1, %c0_2] : memref<1x4x88x4xbf16, #tpu.memory_space<vmem>>, vector<1x1x72x4xbf16>
    %1 = vector.shape_cast %0 : vector<1x1x72x4xbf16> to vector<72x4xbf16>
    %c0_3 = arith.constant 0 : index
    %c0_4 = arith.constant 0 : index
    %c0_5 = arith.constant 0 : index
    %2 = vector.load %arg2[%c0_3, %c0_4, %c0_5] : memref<9x4x128xbf16, #tpu.memory_space<vmem>>, vector<1x4x128xbf16>
    %3 = vector.shape_cast %2 : vector<1x4x128xbf16> to vector<4x128xbf16>
    %cst = arith.constant dense<0.000000e+00> : vector<72x128xf32>
    %4 = tpu.matmul %1, %3, %cst {dimension_numbers = #tpu.dot_dimension_numbers<[1], [0], [0], [1], [0, 0, 1, 1], [], []>} : vector<72x4xbf16>, vector<4x128xbf16>, vector<72x128xf32> -> vector<72x128xf32>
    %c0_6 = arith.constant 0 : index
    %c1 = arith.constant 1 : index
    %c0_7 = arith.constant 0 : index
    %c0_8 = arith.constant 0 : index
    %5 = vector.load %arg1[%c0_6, %c1, %c0_7, %c0_8] : memref<1x4x88x4xbf16, #tpu.memory_space<vmem>>, vector<1x1x72x4xbf16>
    %6 = vector.shape_cast %5 : vector<1x1x72x4xbf16> to vector<72x4xbf16>
    %c1_9 = arith.constant 1 : index
    %c0_10 = arith.constant 0 : index
    %c0_11 = arith.constant 0 : index
    %7 = vector.load %arg2[%c1_9, %c0_10, %c0_11] : memref<9x4x128xbf16, #tpu.memory_space<vmem>>, vector<1x4x128xbf16>
    %8 = vector.shape_cast %7 : vector<1x4x128xbf16> to vector<4x128xbf16>
    %cst_12 = arith.constant dense<0.000000e+00> : vector<72x128xf32>
    %9 = tpu.matmul %6, %8, %cst_12 {dimension_numbers = #tpu.dot_dimension_numbers<[1], [0], [0], [1], [0, 0, 1, 1], [], []>} : vector<72x4xbf16>, vector<4x128xbf16>, vector<72x128xf32> -> vector<72x128xf32>
    %10 = arith.addf %4, %9 : vector<72x128xf32>
    %c0_13 = arith.constant 0 : index
    %c0_14 = arith.constant 0 : index
    %c1_15 = arith.constant 1 : index
    %c0_16 = arith.constant 0 : index
    %11 = vector.load %arg1[%c0_13, %c0_14, %c1_15, %c0_16] : memref<1x4x88x4xbf16, #tpu.memory_space<vmem>>, vector<1x1x72x4xbf16>
    %12 = vector.shape_cast %11 : vector<1x1x72x4xbf16> to vector<72x4xbf16>
    %c2 = arith.constant 2 : index
    %c0_17 = arith.constant 0 : index
    %c0_18 = arith.constant 0 : index
    %13 = vector.load %arg2[%c2, %c0_17, %c0_18] : memref<9x4x128xbf16, #tpu.memory_space<vmem>>, vector<1x4x128xbf16>
    %14 = vector.shape_cast %13 : vector<1x4x128xbf16> to vector<4x128xbf16>
    %cst_19 = arith.constant dense<0.000000e+00> : vector<72x128xf32>
    %15 = tpu.matmul %12, %14, %cst_19 {dimension_numbers = #tpu.dot_dimension_numbers<[1], [0], [0], [1], [0, 0, 1, 1], [], []>} : vector<72x4xbf16>, vector<4x128xbf16>, vector<72x128xf32> -> vector<72x128xf32>
    %16 = arith.addf %10, %15 : vector<72x128xf32>
    %c0_20 = arith.constant 0 : index
    %c2_21 = arith.constant 2 : index
    %c0_22 = arith.constant 0 : index
    %c0_23 = arith.constant 0 : index
    %17 = vector.load %arg1[%c0_20, %c2_21, %c0_22, %c0_23] : memref<1x4x88x4xbf16, #tpu.memory_space<vmem>>, vector<1x1x72x4xbf16>
    %18 = vector.shape_cast %17 : vector<1x1x72x4xbf16> to vector<72x4xbf16>
    %c3 = arith.constant 3 : index
    %c0_24 = arith.constant 0 : index
    %c0_25 = arith.constant 0 : index
    %19 = vector.load %arg2[%c3, %c0_24, %c0_25] : memref<9x4x128xbf16, #tpu.memory_space<vmem>>, vector<1x4x128xbf16>
    %20 = vector.shape_cast %19 : vector<1x4x128xbf16> to vector<4x128xbf16>
    %cst_26 = arith.constant dense<0.000000e+00> : vector<72x128xf32>
    %21 = tpu.matmul %18, %20, %cst_26 {dimension_numbers = #tpu.dot_dimension_numbers<[1], [0], [0], [1], [0, 0, 1, 1], [], []>} : vector<72x4xbf16>, vector<4x128xbf16>, vector<72x128xf32> -> vector<72x128xf32>
    %22 = arith.addf %16, %21 : vector<72x128xf32>
    %c0_27 = arith.constant 0 : index
    %c3_28 = arith.constant 3 : index
    %c0_29 = arith.constant 0 : index
    %c0_30 = arith.constant 0 : index
    %23 = vector.load %arg1[%c0_27, %c3_28, %c0_29, %c0_30] : memref<1x4x88x4xbf16, #tpu.memory_space<vmem>>, vector<1x1x72x4xbf16>
    %24 = vector.shape_cast %23 : vector<1x1x72x4xbf16> to vector<72x4xbf16>
    %c4 = arith.constant 4 : index
    %c0_31 = arith.constant 0 : index
    %c0_32 = arith.constant 0 : index
    %25 = vector.load %arg2[%c4, %c0_31, %c0_32] : memref<9x4x128xbf16, #tpu.memory_space<vmem>>, vector<1x4x128xbf16>
    %26 = vector.shape_cast %25 : vector<1x4x128xbf16> to vector<4x128xbf16>
    %cst_33 = arith.constant dense<0.000000e+00> : vector<72x128xf32>
    %27 = tpu.matmul %24, %26, %cst_33 {dimension_numbers = #tpu.dot_dimension_numbers<[1], [0], [0], [1], [0, 0, 1, 1], [], []>} : vector<72x4xbf16>, vector<4x128xbf16>, vector<72x128xf32> -> vector<72x128xf32>
    %28 = arith.addf %22, %27 : vector<72x128xf32>
    %c0_34 = arith.constant 0 : index
    %c2_35 = arith.constant 2 : index
    %c1_36 = arith.constant 1 : index
    %c0_37 = arith.constant 0 : index
    %29 = vector.load %arg1[%c0_34, %c2_35, %c1_36, %c0_37] : memref<1x4x88x4xbf16, #tpu.memory_space<vmem>>, vector<1x1x72x4xbf16>
    %30 = vector.shape_cast %29 : vector<1x1x72x4xbf16> to vector<72x4xbf16>
    %c5 = arith.constant 5 : index
    %c0_38 = arith.constant 0 : index
    %c0_39 = arith.constant 0 : index
    %31 = vector.load %arg2[%c5, %c0_38, %c0_39] : memref<9x4x128xbf16, #tpu.memory_space<vmem>>, vector<1x4x128xbf16>
    %32 = vector.shape_cast %31 : vector<1x4x128xbf16> to vector<4x128xbf16>
    %cst_40 = arith.constant dense<0.000000e+00> : vector<72x128xf32>
    %33 = tpu.matmul %30, %32, %cst_40 {dimension_numbers = #tpu.dot_dimension_numbers<[1], [0], [0], [1], [0, 0, 1, 1], [], []>} : vector<72x4xbf16>, vector<4x128xbf16>, vector<72x128xf32> -> vector<72x128xf32>
    %34 = arith.addf %28, %33 : vector<72x128xf32>
    %c0_41 = arith.constant 0 : index
    %c0_42 = arith.constant 0 : index
    %c9 = arith.constant 9 : index
    %c0_43 = arith.constant 0 : index
    %35 = vector.load %arg1[%c0_41, %c0_42, %c9, %c0_43] : memref<1x4x88x4xbf16, #tpu.memory_space<vmem>>, vector<1x1x72x4xbf16>
    %36 = vector.shape_cast %35 : vector<1x1x72x4xbf16> to vector<72x4xbf16>
    %c6 = arith.constant 6 : index
    %c0_44 = arith.constant 0 : index
    %c0_45 = arith.constant 0 : index
    %37 = vector.load %arg2[%c6, %c0_44, %c0_45] : memref<9x4x128xbf16, #tpu.memory_space<vmem>>, vector<1x4x128xbf16>
    %38 = vector.shape_cast %37 : vector<1x4x128xbf16> to vector<4x128xbf16>
    %cst_46 = arith.constant dense<0.000000e+00> : vector<72x128xf32>
    %39 = tpu.matmul %36, %38, %cst_46 {dimension_numbers = #tpu.dot_dimension_numbers<[1], [0], [0], [1], [0, 0, 1, 1], [], []>} : vector<72x4xbf16>, vector<4x128xbf16>, vector<72x128xf32> -> vector<72x128xf32>
    %40 = arith.addf %34, %39 : vector<72x128xf32>
    %c0_47 = arith.constant 0 : index
    %c1_48 = arith.constant 1 : index
    %c9_49 = arith.constant 9 : index
    %c0_50 = arith.constant 0 : index
    %41 = vector.load %arg1[%c0_47, %c1_48, %c9_49, %c0_50] : memref<1x4x88x4xbf16, #tpu.memory_space<vmem>>, vector<1x1x72x4xbf16>
    %42 = vector.shape_cast %41 : vector<1x1x72x4xbf16> to vector<72x4xbf16>
    %c7 = arith.constant 7 : index
    %c0_51 = arith.constant 0 : index
    %c0_52 = arith.constant 0 : index
    %43 = vector.load %arg2[%c7, %c0_51, %c0_52] : memref<9x4x128xbf16, #tpu.memory_space<vmem>>, vector<1x4x128xbf16>
    %44 = vector.shape_cast %43 : vector<1x4x128xbf16> to vector<4x128xbf16>
    %cst_53 = arith.constant dense<0.000000e+00> : vector<72x128xf32>
    %45 = tpu.matmul %42, %44, %cst_53 {dimension_numbers = #tpu.dot_dimension_numbers<[1], [0], [0], [1], [0, 0, 1, 1], [], []>} : vector<72x4xbf16>, vector<4x128xbf16>, vector<72x128xf32> -> vector<72x128xf32>
    %46 = arith.addf %40, %45 : vector<72x128xf32>
    %c0_54 = arith.constant 0 : index
    %c0_55 = arith.constant 0 : index
    %c10 = arith.constant 10 : index
    %c0_56 = arith.constant 0 : index
    %47 = vector.load %arg1[%c0_54, %c0_55, %c10, %c0_56] : memref<1x4x88x4xbf16, #tpu.memory_space<vmem>>, vector<1x1x72x4xbf16>
    %48 = vector.shape_cast %47 : vector<1x1x72x4xbf16> to vector<72x4xbf16>
    %c8 = arith.constant 8 : index
    %c0_57 = arith.constant 0 : index
    %c0_58 = arith.constant 0 : index
    %49 = vector.load %arg2[%c8, %c0_57, %c0_58] : memref<9x4x128xbf16, #tpu.memory_space<vmem>>, vector<1x4x128xbf16>
    %50 = vector.shape_cast %49 : vector<1x4x128xbf16> to vector<4x128xbf16>
    %cst_59 = arith.constant dense<0.000000e+00> : vector<72x128xf32>
    %51 = tpu.matmul %48, %50, %cst_59 {dimension_numbers = #tpu.dot_dimension_numbers<[1], [0], [0], [1], [0, 0, 1, 1], [], []>} : vector<72x4xbf16>, vector<4x128xbf16>, vector<72x128xf32> -> vector<72x128xf32>
    %52 = arith.addf %46, %51 : vector<72x128xf32>
    %c0_60 = arith.constant 0 : index
    %c0_61 = arith.constant 0 : index
    %53 = vector.load %arg3[%c0_60, %c0_61] : memref<1x128xf32, #tpu.memory_space<vmem>>, vector<1x128xf32>
    %54 = vector.broadcast %53 : vector<1x128xf32> to vector<72x128xf32>
    %55 = arith.addf %52, %54 : vector<72x128xf32>
    %cst_62 = arith.constant 0.000000e+00 : f32
    %56 = vector.broadcast %cst_62 : f32 to vector<72x128xf32>
    %57 = arith.maximumf %55, %56 : vector<72x128xf32>
    %58 = arith.truncf %57 : vector<72x128xf32> to vector<72x128xbf16>
    %c0_63 = arith.constant 0 : index
    %c0_64 = arith.constant 0 : index
    %c0_65 = arith.constant 0 : index
    %59 = vector.load %arg6[%c0_63, %c0_64, %c0_65] : memref<1x72x128xbf16, #tpu.memory_space<vmem>>, vector<1x72x128xbf16>
    %60 = vector.shape_cast %59 : vector<1x72x128xbf16> to vector<72x128xbf16>
    %61 = vector.shape_cast %58 : vector<72x128xbf16> to vector<1x72x128xbf16>
    tpu.vector_store %arg6[%c0_63, %c0_64, %c0_65], %61 {strides = array<i32>} : memref<1x72x128xbf16, #tpu.memory_space<vmem>>, vector<1x72x128xbf16>,
    %c0_66 = arith.constant 0 : index
    %c3_67 = arith.constant 3 : index
    %c0_68 = arith.constant 0 : index
    %c0_69 = arith.constant 0 : index
    %62 = vector.load %arg1[%c0_66, %c3_67, %c0_68, %c0_69] : memref<1x4x88x4xbf16, #tpu.memory_space<vmem>>, vector<1x1x72x4xbf16>
    %63 = vector.shape_cast %62 : vector<1x1x72x4xbf16> to vector<72x4xbf16>
    %c0_70 = arith.constant 0 : index
    %c0_71 = arith.constant 0 : index
    %64 = vector.load %arg4[%c0_70, %c0_71] : memref<4x128xbf16, #tpu.memory_space<vmem>>, vector<4x128xbf16>
    %cst_72 = arith.constant dense<0.000000e+00> : vector<72x128xf32>
    %65 = tpu.matmul %63, %64, %cst_72 {dimension_numbers = #tpu.dot_dimension_numbers<[1], [0], [0], [1], [0, 0, 1, 1], [], []>} : vector<72x4xbf16>, vector<4x128xbf16>, vector<72x128xf32> -> vector<72x128xf32>
    %c0_73 = arith.constant 0 : index
    %c0_74 = arith.constant 0 : index
    %66 = vector.load %arg5[%c0_73, %c0_74] : memref<1x128xf32, #tpu.memory_space<vmem>>, vector<1x128xf32>
    %67 = vector.broadcast %66 : vector<1x128xf32> to vector<72x128xf32>
    %68 = arith.addf %65, %67 : vector<72x128xf32>
    %69 = arith.truncf %68 : vector<72x128xf32> to vector<72x128xbf16>
    %c0_75 = arith.constant 0 : index
    %c0_76 = arith.constant 0 : index
    %c0_77 = arith.constant 0 : index
    %70 = vector.load %arg7[%c0_75, %c0_76, %c0_77] : memref<1x72x128xbf16, #tpu.memory_space<vmem>>, vector<1x72x128xbf16>
    %71 = vector.shape_cast %70 : vector<1x72x128xbf16> to vector<72x128xbf16>
    %72 = vector.shape_cast %69 : vector<72x128xbf16> to vector<1x72x128xbf16>
    tpu.vector_store %arg7[%c0_75, %c0_76, %c0_77], %72 {strides = array<i32>} : memref<1x72x128xbf16, #tpu.memory_space<vmem>>, vector<1x72x128xbf16>,
    return
  }
  func.func @transform_0(%arg0: i32) -> (i32, i32, i32, i32) {
    %c0_i32 = arith.constant 0 : i32
    %c0_i32_0 = arith.constant 0 : i32
    %c0_i32_1 = arith.constant 0 : i32
    %c0_i32_2 = arith.constant 0 : i32
    return %arg0, %c0_i32, %c0_i32_0, %c0_i32_1 : i32, i32, i32, i32
  }
  func.func @transform_1(%arg0: i32) -> (i32, i32, i32) {
    %c0_i32 = arith.constant 0 : i32
    %c0_i32_0 = arith.constant 0 : i32
    %c0_i32_1 = arith.constant 0 : i32
    %c0_i32_2 = arith.constant 0 : i32
    return %c0_i32, %c0_i32_0, %c0_i32_1 : i32, i32, i32
  }
  func.func @transform_2(%arg0: i32) -> (i32, i32) {
    %c0_i32 = arith.constant 0 : i32
    %c0_i32_0 = arith.constant 0 : i32
    %c0_i32_1 = arith.constant 0 : i32
    return %c0_i32, %c0_i32_0 : i32, i32
  }
  func.func @transform_3(%arg0: i32) -> (i32, i32) {
    %c0_i32 = arith.constant 0 : i32
    %c0_i32_0 = arith.constant 0 : i32
    %c0_i32_1 = arith.constant 0 : i32
    return %c0_i32, %c0_i32_0 : i32, i32
  }
  func.func @transform_4(%arg0: i32) -> (i32, i32) {
    %c0_i32 = arith.constant 0 : i32
    %c0_i32_0 = arith.constant 0 : i32
    %c0_i32_1 = arith.constant 0 : i32
    return %c0_i32, %c0_i32_0 : i32, i32
  }
  func.func @transform_5(%arg0: i32) -> (i32, i32, i32) {
    %c0_i32 = arith.constant 0 : i32
    %c0_i32_0 = arith.constant 0 : i32
    %c0_i32_1 = arith.constant 0 : i32
    return %arg0, %c0_i32, %c0_i32_0 : i32, i32, i32
  }
  func.func @transform_6(%arg0: i32) -> (i32, i32, i32) {
    %c0_i32 = arith.constant 0 : i32
    %c0_i32_0 = arith.constant 0 : i32
    %c0_i32_1 = arith.constant 0 : i32
    return %arg0, %c0_i32, %c0_i32_0 : i32, i32, i32
  }
}

</mosaic_0001>

<bundles_post_ra>
// kernel: tpu_custom_call.1
= control target key start
LH: loop header
LB: loop body
LE: loop exit
PB: predicated region body
PF: predicated region fallthrough
CT: control target
= control target key end

     0   :  { %12 = vsyncpa [#allocation3], 0  ;;  %s3241_s0 = inlined_call_operand.vmem [shape: bf16[2,4,88,4], index: 0, kind: input, shape index: {}]   ;;  %s3242_s1 = inlined_call_operand.vmem [shape: bf16[9,4,128], index: 1, kind: input, shape index: {}]   ;;  %s3243_s2 = inlined_call_operand.vmem [shape: f32[1,128], index: 2, kind: input, shape index: {}]   ;;  %s3244_s3 = inlined_call_operand.vmem [shape: bf16[4,128], index: 3, kind: input, shape index: {}]   ;;  %s3245_s4 = inlined_call_operand.vmem [shape: f32[1,128], index: 4, kind: input, shape index: {}]   ;;  %s3246_s5 = inlined_call_operand.hbm [shape: bf16[2,72,128], index: 5, kind: output, shape index: {0}]   ;;  %s3247_s6 = inlined_call_operand.hbm [shape: bf16[2,72,128], index: 6, kind: output, shape index: {1}]  }
   0x1   :  { %14 = vsyncpa [#allocation3 + $0x1], 0 }
   0x2   :  { %15 = vsyncpa [#allocation5], 0 }
   0x3   :  { %17 = vsyncpa [#allocation5 + $0x1], 0  ;;  %s2740_s21 = smov 0   ;;  %s2742_s22 = smov 0  }
   0x4   :  { %s2744_s23 = smov 0   ;;  %s2746_s24 = smov 0  }
   0x5 LB: > { %s2761_s25 = sadd.s32 4294967295, %s2697_s24   ;;  %s1972_s26 = sadd.s32 4294967294, %s2697_s24   ;;  %s2697_s24 = sphi %s2746_s24, %s3253_s24   ;;  %s2693_s23 = sphi %s2744_s23, %s3252_s23   ;;  %s2689_s22 = sphi %s2742_s22, %s3251_s22   ;;  %s2685_s21 = sphi %s2740_s21, %s3250_s21  }
   0x6   : > { %s2765_s27 = sadd.s32 1, %s2697_s24   ;;  %s140_s28 = sadd.s32 1, %s2693_s23 }
   0x7   : > { %s137_s29 = ssub.s32 %s2697_s24, %s2765_s27  ;;  %p150_p0 = scmp.ne.s32.totalorder %s2693_s23, %s2689_s22 }
   0x8   : > { %p138_p1 = scmp.eq.s32.totalorder %s137_s29, 0  ;;  %p151_p2 = scmp.eq.s32.totalorder %s2761_s25, 1 }
   0x9   : > { %p156_p3 = scmp.ne.s32.totalorder %s2689_s22, %s2685_s21  ;;  %p157_p4 = scmp.eq.s32.totalorder %s1972_s26, 1 }
   0xa   : > { %s2776_s30 = scalar_select %p138_p1, %s2693_s23, %s140_s28  }
   0xb   : > { %p2778_p5 = por %p151_p2, %p150_p0  ;;  %p2782_p6 = por %p157_p4, %p156_p3 }
   0xc   : > { %p1975_p7 = scmp.ge.s32.totalorder %s2697_s24, 1  ;;  %p221_p8 = scmp.lt.s32.totalorder %s2697_s24, 3 }
   0xe   : > { %p222_p9 = pnand %p1975_p7, %p221_p8 }
   0xf   : > { %v1986_v0 = vld [vmem:[%s3242_s1 + $0x2] sm:$0x3] (!%p222_p9)  ;;  %vm323_vm0 = vcmask (!%p222_p9), 1041408   ;;  %v271_v1 = vld [vmem:[%s3242_s1] sm:$0x3] (!%p222_p9)  ;;  %v2699_v2 = vmov (!%p222_p9), 0.0  }
  0x10   : > { %225 = sbr.rel (%p222_p9) target bundleno = 477 (0x1dd), region = 40  ;;  %2285 = vmatprep.subr.bf16.mxu0 (!%p222_p9), %v2699_v2  ;;  %v325_v3 = vsel (!%p222_p9), %vm323_vm0, %v1986_v0, 0  ;;  %2307 = vmatprep.subr.bf16.mxu1 (!%p222_p9), %v2699_v2  ;;  %v438_v4 = vsel (!%p222_p9), %vm323_vm0, %v271_v1, 0  ;;  %p256_p10 = scmp.lt.s32.totalorder (!%p222_p9), %s2761_s25, 1  ;;  %vm2700_vm1 = vmmov (!%p222_p9), 0   ;;  %vm307_vm2 = vcmask (!%p222_p9), 31744  }
  0x11   : > { %2286 = vmatpush3.bf16.msra.mxu0 (!%p222_p9), %v325_v3  ;;  %2308 = vmatpush3.bf16.msra.mxu1 (!%p222_p9), %v438_v4  ;;  %v2007_v5 = vld [vmem:[%s3242_s1 + $0x4] sm:$0x3] (!%p222_p9)  ;;  %v2027_v6 = vld [vmem:[%s3242_s1 + $0x6] sm:$0x3] (!%p222_p9)  ;;  %vm549_vm3 = vsmask.f32 (!%p222_p9), 7424 }
  0x12   : > { %2287 = vmatprep.mubr.msk.bf16.mxu0 (!%p222_p9), %vm2700_vm1, %v2699_v2  ;;  %2309 = vmatprep.mubr.msk.bf16.mxu1 (!%p222_p9), %vm2700_vm1, %v2699_v2  ;;  %v605_v8 = vsel (!%p222_p9), %vm323_vm0, %v2007_v5, 0  ;;  %v739_v10 = vsel (!%p222_p9), %vm323_vm0, %v2027_v6, 0  ;;  %v2047_v28 = vld [vmem:[%s3242_s1 + $0x8] sm:$0x3] (!%p222_p9)  ;;  %v2068_v29 = vld [vmem:[%s3242_s1 + $0xa] sm:$0x3] (!%p222_p9) }
  0x13   : > { %2329 = vmatprep.subr.bf16.mxu0 (!%p222_p9), %v2699_v2  ;;  %2351 = vmatprep.subr.bf16.mxu1 (!%p222_p9), %v2699_v2  ;;  %v873_v34 = vsel (!%p222_p9), %vm323_vm0, %v2047_v28, 0  ;;  %v1048_v35 = vsel (!%p222_p9), %vm323_vm0, %v2068_v29, 0  ;;  %v2079_v3 = vld [vmem:[%s3242_s1 + $0xc] sm:$0x3] (!%p222_p9)  ;;  %v2100_v5 = vld [vmem:[%s3242_s1 + $0xe] sm:$0x3] (!%p222_p9) }
  0x14   : > { %v1223_v6 = vsel (!%p222_p9), %vm323_vm0, %v2079_v3, 0  ;;  %vm1487_vm4 = vcmask (!%p222_p9), 1046528   ;;  %s3101_s19 = sand.u32 (!%p222_p9), 1, %s2689_s22   ;;  %s2701_s29 = smov (!%p222_p9), [#allocation4]  }
  0x15   : > { %s2505_s9 = smul.u32 (!%p222_p9), 36, %s3101_s19 }
  0x17   : > { %s257_s13 = scalar_select %p256_p10, %s2761_s25, 1 }
  0x18   : > { %s3118_s10 = scalar_lea.vmem [#allocation4], %s2505_s9  ;;  %s3123_s11 = scalar_lea.vmem [#allocation2], %s2505_s9 }
  0x19   : > { %s2506_s14 = smul.u32 176, %s257_s13  ;;  %s1878_s12 = sshll.u32 %s3118_s10, 4  ;;  %s3150_s12 = int_to_ptr.vmem [resolvable:$true] %s1878_s12 }
  0x1a   : > { %s2507_s13 = smul.u32 576, %s2761_s25  ;;  %s1862_s25 = sshll.u32 %s3123_s11, 4  ;;  %s3167_s25 = int_to_ptr.vmem [resolvable:$true] %s1862_s25 }
  0x1b   : > { %s2815_s26 = scalar_lea.vmem %s3241_s0, %s2506_s14  ;;  %s2603_s28 = scalar_lea.vmem %s3150_s12, 576 }
  0x1c   : > { %v2557_v7 = vld [vmem:[%s2815_s26 + $0x2c] sm:$0xff]   ;;  %v2558_v9 = vld [vmem:[%s2815_s26] sm:$0xff]   ;;  %v2559_v11 = vld [vmem:[%s2815_s26 + $0x34] sm:$0xff]   ;;  %s3159_s16 = scalar_lea.hbm %s3247_s6, %s2507_s13  ;;  %s3165_s20 = scalar_lea.hbm %s3246_s5, %s2507_s13 }
  0x1d   : > { %2288 = vmatmul.mubr.msk.bf16.vlgmr.msra.gmra.mrb[0].mxu0 %vm307_vm2, %v2557_v7  ;;  %2310 = vmatmul.mubr.msk.bf16.vlgmr.msra.gmra.mrb[0].mxu1 %vm307_vm2, %v2558_v9  ;;  %v2560_v12 = vld [vmem:[%s2815_s26 + $0x8] sm:$0xff]   ;;  %v2561_v13 = vld [vmem:[%s2815_s26 + $0x3c] sm:$0xff]   ;;  %v2562_v14 = vld [vmem:[%s2815_s26 + $0x10] sm:$0xff]   ;;  %p2604_p11 = scmp.ne.s32.totalorder %s3150_s12, %s2603_s28  ;;  %s2607_s9 = sshll.u32 %s2701_s29, 4  ;;  %s2608_s9 = int_to_ptr.vmem [resolvable:$false] %s2607_s9 }
  0x1e   : > { %2330 = vmatpush3.bf16.msra.mxu0 %v605_v8  ;;  %2352 = vmatpush3.bf16.msra.mxu1 %v739_v10  ;;  %v2563_v15 = vld [vmem:[%s2815_s26 + $0x44] sm:$0xff]   ;;  %v2564_v16 = vld [vmem:[%s2815_s26 + $0x18] sm:$0xff]   ;;  %v2565_v20 = vld [vmem:[%s2815_s26 + $0x4c] ss:$0 sps:$4 sm:$0xff]   ;;  %v1398_v10 = vsel %vm323_vm0, %v2100_v5, 0  ;;  %s2609_s14 = scalar_lea.vmem %s2608_s9, 1152  ;;  %p2610_p0 = scmp.lt.s32.totalorder %s3150_s12, %s2608_s9 }
  0x1f   : > { %2291 = vmatprep.mubr.msk.bf16.mxu0 %vm2700_vm1, %v2699_v2  ;;  %2313 = vmatprep.mubr.msk.bf16.mxu1 %vm2700_vm1, %v2699_v2  ;;  %v2567_v17 = vld [vmem:[%s2815_s26] sm:$0xff]   ;;  %v2568_v18 = vld [vmem:[%s2815_s26 + $0x8] sm:$0xff]   ;;  %v2570_v27 = vld [vmem:[%s2815_s26 + $0x10] sm:$0xff]   ;;  %p2605_p12 = pnand %p2604_p11, %p2778_p5  ;;  %p2611_p1 = scmp.lt.s32.totalorder %s2609_s14, %s2603_s28 }
  0x20   : > { %2373 = vmatprep.subr.bf16.mxu0 %v2699_v2  ;;  %2395 = vmatprep.subr.bf16.mxu1 %v2699_v2  ;;  %v553_v19 = vshll.u32 %v2567_v17, 16  ;;  %v2566_v21 = vld [vmem:[%s2815_s26 + $0x20] ss:$0 sps:$4 sm:$0xff]   ;;  %v551_v22 = vshrl.u32 %v2567_v17, 16  ;;  %v558_v24 = vshll.u32 %v2568_v18, 16  ;;  %v2569_v31 = vld [vmem:[%s2815_s26 + $0x58] sm:$0xff]  }
  0x21   : > { %v562_v32 = vshrl.u32 %v2568_v18, 16  ;;  %v566_v33 = vshll.u32 %v2570_v27, 16  ;;  %v2572_v38 = vld [vmem:[%s2815_s26 + $0x18] sm:$0xff]   ;;  %v2571_v39 = vld [vmem:[%s2815_s26 + $0x60] sm:$0xff]   ;;  %v570_v41 = vshrl.u32 %v2570_v27, 16  ;;  %v2573_v47 = vld [vmem:[%s2815_s26 + $0x68] sm:$0xff]   ;;  %p2606_p13 = pneg %p2605_p12  ;;  %p2612_p2 = por %p2611_p1, %p2610_p0 }
  0x22   : > { %v555_v23 = vrot.slane %v553_v19, 1  ;;  %v560_v26 = vrot.slane %v558_v24, 1  ;;  %v574_v42 = vshll.u32 %v2572_v38, 16  ;;  %v2574_v45 = vld [vmem:[%s2815_s26 + $0x20] sm:$0x1f]   ;;  %v578_v48 = vshrl.u32 %v2572_v38, 16 }
  0x23   : > { %v568_v37 = vrot.slane %v566_v33, 1  ;;  %v582_v49 = vshll.u32 %v2574_v45, 16  ;;  %v2575_v53 = vld [vmem:[%s2815_s26 + $0x70] sm:$0xff]   ;;  %v2578_v54 = vld [vmem:[%s2815_s26 + $0x58] sm:$0xff]   ;;  %v586_v55 = vshrl.u32 %v2574_v45, 16  ;;  %v2579_v56 = vld [vmem:[%s2815_s26 + $0x60] sm:$0xff]   ;;  %p2613_p3 = pnand %p2612_p2, %p2606_p13 }
  0x24   : > { %v556_v25 = vor.u32 %v555_v23, %v551_v22  ;;  %v564_v36 = vor.u32 %v562_v32, %v560_v26  ;;  %v576_v44 = vrot.slane %v574_v42, 1  ;;  %v996_v57 = vshll.u32 %v2578_v54, 16  ;;  %v2576_v59 = vld [vmem:[%s2815_s26 + $0x78] ss:$0 sps:$4 sm:$0xff]   ;;  %v2581_v1 = vld [vmem:[%s2815_s26 + $0x68] sm:$0xff]   ;;  %v2584_v29 = vld [vmem:[%s2815_s26 + $0x9c] sm:$0xff]  }
  0x25   : > { %2292 = vmatmul.mubr.msk.bf16.gmra.mrb[4].mxu0 %vm307_vm2, %v2559_v11  ;;  %2314 = vmatmul.mubr.msk.bf16.gmra.mrb[4].mxu1 %vm307_vm2, %v2560_v12  ;;  %v572_v43 = vor.u32 %v570_v41, %v568_v37  ;;  %v584_v51 = vrot.slane %v582_v49, 1  ;;  %v994_v60 = vshrl.u32 %v2578_v54, 16  ;;  %v1001_v62 = vshll.u32 %v2579_v56, 16  ;;  %v2577_v4 = vld [vmem:[%s2815_s26 + $0x84] sm:$0xff]   ;;  %v2589_v32 = vld [vmem:[%s2815_s26 + $0x30] sm:$0xff]  }
  0x26   : > { %2295 = vmatprep.mubr.msk.bf16.mxu0 %vm2700_vm1, %v2699_v2  ;;  %2317 = vmatprep.mubr.msk.bf16.mxu1 %vm2700_vm1, %v2699_v2  ;;  %v561_v30 = vsel %vm549_vm3, %v556_v25, %v560_v26  ;;  %v569_v40 = vsel %vm549_vm3, %v564_v36, %v568_v37  ;;  %v580_v50 = vor.u32 %v578_v48, %v576_v44  ;;  %v998_v61 = vrot.slane %v996_v57, 1  ;;  %v1131_v27 = vld [vmem:[%s2815_s26 + $0x4] sm:$0xf]  ;;  %v2956_v28 = vld [vmem:[%s2815_s26 + $0x8] sm:$0xf]  ;;  %v2590_v36 = vld [vmem:[%s2815_s26 + $0x38] sm:$0xff]  }
  0x27   : > { %v577_v46 = vsel %vm549_vm3, %v572_v43, %v576_v44  ;;  %v588_v58 = vor.u32 %v586_v55, %v584_v51  ;;  %v1003_v0 = vrot.slane %v1001_v62, 1  ;;  %v1005_v8 = vshrl.u32 %v2579_v56, 16  ;;  %v2586_v38 = vld [vmem:[%s2815_s26 + $0xa4] ss:$0 sps:$4 sm:$0xff]   ;;  %v2979_v48 = vld [vmem:[%s2815_s26 + $0x14] sm:$0xff]  }
  0x28   : > { %v585_v52 = vsel %vm549_vm3, %v580_v50, %v584_v51  ;;  %v999_v63 = vor.u32 %v998_v61, %v994_v60  ;;  %v1009_v9 = vshll.u32 %v2581_v1, 16  ;;  %v1346_v37 = vshll.u32 %v2589_v32, 16  ;;  %v2592_v51 = vld [vmem:[%s2815_s26 + $0x40] sm:$0xff]  }
  0x29   : > { %v1007_v11 = vor.u32 %v1005_v8, %v1003_v0  ;;  %v1344_v43 = vshrl.u32 %v2589_v32, 16  ;;  %v1351_v45 = vshll.u32 %v2590_v36, 16  ;;  %v1184_v56 = vshll.u32 %v2979_v48, 16  ;;  %v1481_v32 = vld [vmem:[%s2815_s26 + $0x4] sm:$0xe] }
  0x2a   : > { %v1004_v7 = vsel %vm549_vm3, %v999_v63, %v1003_v0  ;;  %v1011_v12 = vrot.slane %v1009_v9, 1  ;;  %v1348_v44 = vrot.slane %v1346_v37, 1  ;;  %v1359_v60 = vshll.u32 %v2592_v51, 16  ;;  %v2999_v0 = vld [vmem:[%s2815_s26 + $0x1c] sm:$0xff]  }
  0x2b   : > { %v1353_v50 = vrot.slane %v1351_v45, 1  ;;  %v1186_v63 = vrot.slane %v1184_v56, 1  ;;  %v1363_v9 = vshrl.u32 %v2592_v51, 16 }
  0x2c   : > { %v1349_v49 = vor.u32 %v1348_v44, %v1344_v43  ;;  %v1361_v3 = vrot.slane %v1359_v60, 1  ;;  %v2600_v44 = vld [vmem:[%s2815_s26 + $0x94] sm:$0xff]  }
  0x2d   : > { %2296 = vmatmul.mubr.msk.bf16.gmra.mrb[8].mxu0 %vm307_vm2, %v2561_v13  ;;  %2318 = vmatmul.mubr.msk.bf16.gmra.mrb[8].mxu1 %vm307_vm2, %v2562_v14  ;;  %v2583_v13 = vld [vmem:[%s2815_s26 + $0x70] sm:$0xff]  }
  0x2e   : > { %2299 = vmatprep.mubr.msk.bf16.mxu0 %vm2700_vm1, %v2699_v2  ;;  %2321 = vmatprep.mubr.msk.bf16.mxu1 %vm2700_vm1, %v2699_v2  ;;  %v2580_v14 = vld [vmem:[%s2815_s26 + $0x8c] sm:$0xff]   ;;  %v1017_v17 = vshll.u32 %v2583_v13, 16  ;;  %v1021_v23 = vshrl.u32 %v2583_v13, 16  ;;  %v3015_v13 = vld [vmem:[%s2815_s26 + $0x24] sm:$0x1f]  }
  0x2f   : > { %v1495_v45 = vrot.slane %v3015_v13, 1 }
  0x30   : > { %v1019_v19 = vrot.slane %v1017_v17, 1 }
  0x32   : > { %v1023_v25 = vor.u32 %v1021_v23, %v1019_v19 }
  0x35   : > { %2300 = vmatmul.mubr.msk.bf16.gmra.mrb[12].mxu0 %vm307_vm2, %v2563_v15  ;;  %2322 = vmatmul.mubr.msk.bf16.gmra.mrb[12].mxu1 %vm307_vm2, %v2564_v16  ;;  %v1012_v15 = vsel %vm549_vm3, %v1007_v11, %v1011_v12  ;;  %v1013_v16 = vshrl.u32 %v2581_v1, 16 }
  0x36   : > { %2303 = vmatprep.mubr.msk.bf16.mxu0 %vm2700_vm1, %v2699_v2  ;;  %2325 = vmatprep.mubr.msk.bf16.mxu1 %vm2700_vm1, %v2699_v2 }
  0x37   : > { %v1015_v18 = vor.u32 %v1013_v16, %v1011_v12  ;;  %v2596_v16 = vld [vmem:[%s2815_s26 + $0x50] sm:$0x1f]  }
  0x39   : > { %v1020_v22 = vsel %vm549_vm3, %v1015_v18, %v1019_v19  ;;  %v1196_v18 = vshrl.u32 %v2999_v0, 16  ;;  %v1200_v19 = vshll.u32 %v3015_v13, 16 }
  0x3d   : > { %2304 = vmatmul.mubr.msk.bf16.gmra.mrb[16].mxu0 %vm307_vm2, %v2565_v20  ;;  %2326 = vmatmul.mubr.msk.bf16.gmra.mrb[16].mxu1 %vm307_vm2, %v2566_v21  ;;  %v2585_v20 = vld [vmem:[%s2815_s26 + $0x78] sm:$0x1f]  }
  0x3e   : > { %2331 = vmatprep.mubr.msk.bf16.mxu0 %vm2700_vm1, %v2699_v2  ;;  %2353 = vmatprep.mubr.msk.bf16.mxu1 %vm2700_vm1, %v2699_v2  ;;  %v2582_v21 = vld [vmem:[%s2815_s26 + $0x94] sm:$0xff]   ;;  %v1025_v24 = vshll.u32 %v2585_v20, 16  ;;  %v1029_v33 = vshrl.u32 %v2585_v20, 16 }
  0x40   : > { %v1027_v26 = vrot.slane %v1025_v24, 1  ;;  %v1202_v24 = vrot.slane %v1200_v19, 1 }
  0x45   : > { %2332 = vmatmul.mubr.msk.bf16.vlgmr.msra.gmra.mrb[20].mxu0 %vm307_vm2, %v561_v30  ;;  %2354 = vmatmul.mubr.msk.bf16.vlgmr.msra.gmra.mrb[20].mxu1 %vm307_vm2, %v2569_v31  ;;  %v2080_v30 = vcombine.low %v1131_v27, %v2956_v28  ;;  %v1028_v31 = vsel %vm549_vm3, %v1023_v25, %v1027_v26 }
  0x46   : > { %2374 = vmatpush3.bf16.msra.mxu0 %v873_v34  ;;  %2396 = vmatpush3.bf16.msra.mxu1 %v1048_v35  ;;  %v2967_v34 = vld [vmem:[%s2815_s26 + $0xc] sm:$0xff]  }
  0x47   : > { %2335 = vmatprep.mubr.msk.bf16.mxu0 %vm2700_vm1, %v2699_v2  ;;  %2357 = vmatprep.mubr.msk.bf16.mxu1 %vm2700_vm1, %v2699_v2  ;;  %v1171_v35 = vshll.u32 %v2080_v30, 16  ;;  %v1176_v42 = vshll.u32 %v2967_v34, 16  ;;  %v1180_v55 = vshrl.u32 %v2967_v34, 16 }
  0x48   : > { %2417 = vmatprep.subr.bf16.mxu0 %v2699_v2  ;;  %2439 = vmatprep.subr.bf16.mxu1 %v2699_v2 }
  0x49   : > { %v1173_v41 = vrot.slane %v1171_v35, 1 }
  0x4d   : > { %2336 = vmatmul.mubr.msk.bf16.gmra.mrb[24].mxu0 %vm307_vm2, %v569_v40  ;;  %2358 = vmatmul.mubr.msk.bf16.gmra.mrb[24].mxu1 %vm307_vm2, %v2571_v39  ;;  %v1031_v39 = vor.u32 %v1029_v33, %v1027_v26  ;;  %v1169_v40 = vshrl.u32 %v2080_v30, 16  ;;  %v1204_v30 = vshrl.u32 %v3015_v13, 16 }
  0x4e   : > { %2339 = vmatprep.mubr.msk.bf16.mxu0 %vm2700_vm1, %v2699_v2  ;;  %2361 = vmatprep.mubr.msk.bf16.mxu1 %vm2700_vm1, %v2699_v2 }
  0x4f   : > { %v1206_v33 = vor.u32 %v1204_v30, %v1202_v24 }
  0x55   : > { %2340 = vmatmul.mubr.msk.bf16.gmra.mrb[28].mxu0 %vm307_vm2, %v577_v46  ;;  %2362 = vmatmul.mubr.msk.bf16.gmra.mrb[28].mxu1 %vm307_vm2, %v2573_v47  ;;  %v1174_v46 = vor.u32 %v1173_v41, %v1169_v40  ;;  %v1178_v47 = vrot.slane %v1176_v42, 1  ;;  %v2598_v40 = vld [vmem:[%s2815_s26 + $0x84] sm:$0xff]   ;;  %v2599_v41 = vld [vmem:[%s2815_s26 + $0x8c] sm:$0xff]   ;;  %v1493_v42 = vrot.slane %v2999_v0, 1 }
  0x56   : > { %2343 = vmatprep.mubr.msk.bf16.mxu0 %vm2700_vm1, %v2699_v2  ;;  %2365 = vmatprep.mubr.msk.bf16.mxu1 %vm2700_vm1, %v2699_v2 }
  0x57   : > { %v1179_v54 = vsel %vm549_vm3, %v1174_v46, %v1178_v47  ;;  %v1182_v62 = vor.u32 %v1180_v55, %v1178_v47  ;;  %v1496_v46 = vsel %vm1487_vm4, %v1493_v42, %v1495_v45  ;;  %v2601_v47 = vld [vmem:[%s2815_s26 + $0x9c] sm:$0xff]  }
  0x59   : > { %v1187_v5 = vsel %vm549_vm3, %v1182_v62, %v1186_v63 }
  0x5d   : > { %2344 = vmatmul.mubr.msk.bf16.gmra.mrb[32].mxu0 %vm307_vm2, %v585_v52  ;;  %2366 = vmatmul.mubr.msk.bf16.gmra.mrb[32].mxu1 %vm307_vm2, %v2575_v53  ;;  %v2111_v52 = vld [vmem:[%s3242_s1 + $0x10] sm:$0x3]  ;;  %v1676_v53 = vld [vmem:[%s3244_s3] sm:$0x3] }
  0x5e   : > { %2347 = vmatprep.mubr.msk.bf16.mxu0 %vm2700_vm1, %v2699_v2  ;;  %2369 = vmatprep.mubr.msk.bf16.mxu1 %vm2700_vm1, %v2699_v2  ;;  %v1513_v57 = vsel %vm323_vm0, %v2111_v52, 0  ;;  %v1723_v61 = vsel %vm323_vm0, %v1676_v53, 0 }
  0x65   : > { %2348 = vmatmul.mubr.msk.bf16.gmra.mrb[36].mxu0 %vm307_vm2, %v588_v58  ;;  %2370 = vmatmul.mubr.msk.bf16.gmra.mrb[36].mxu1 %vm307_vm2, %v2576_v59  ;;  %v1354_v58 = vsel %vm549_vm3, %v1349_v49, %v1353_v50  ;;  %v1355_v59 = vshrl.u32 %v2590_v36, 16  ;;  %v2112_v36 = vcombine.low %v1481_v32, %v2956_v28  ;;  %v1491_v28 = vrot.slane %v2979_v48, 1 }
  0x66   : > { %2375 = vmatprep.mubr.msk.bf16.mxu0 %vm2700_vm1, %v2699_v2  ;;  %2397 = vmatprep.mubr.msk.bf16.mxu1 %vm2700_vm1, %v2699_v2 }
  0x67   : > { %v1357_v1 = vor.u32 %v1355_v59, %v1353_v50  ;;  %v1488_v37 = vrot.slane %v2112_v36, 1  ;;  %v1494_v43 = vsel %vm1487_vm4, %v1491_v28, %v1493_v42 }
  0x69   : > { %v1362_v8 = vsel %vm549_vm3, %v1357_v1, %v1361_v3 }
  0x6d   : > { %2376 = vmatmul.mubr.msk.bf16.vlgmr.msra.gmra.mrb[40].mxu0 %vm307_vm2, %v2577_v4  ;;  %2398 = vmatmul.mubr.msk.bf16.vlgmr.msra.gmra.mrb[40].mxu1 %vm307_vm2, %v1004_v7  ;;  %v2594_v4 = vld [vmem:[%s2815_s26 + $0x48] sm:$0xff]   ;;  %v1192_v7 = vshll.u32 %v2999_v0, 16 }
  0x6e   : > { %2418 = vmatpush3.bf16.msra.mxu0 %v1223_v6  ;;  %2440 = vmatpush3.bf16.msra.mxu1 %v1398_v10  ;;  %v1188_v6 = vshrl.u32 %v2979_v48, 16  ;;  %v1367_v10 = vshll.u32 %v2594_v4, 16  ;;  %v2602_v48 = vld [vmem:[%s2815_s26 + $0xa4] ss:$0 sps:$4 sm:$0xff]   ;;  %s1849_s26 = scalar_lea.sflag [#allocation5], %s3101_s19 }
  0x6f   : > { %2379 = vmatprep.mubr.msk.bf16.mxu0 %vm2700_vm1, %v2699_v2  ;;  %2401 = vmatprep.mubr.msk.bf16.mxu1 %vm2700_vm1, %v2699_v2  ;;  %v1194_v12 = vrot.slane %v1192_v7, 1 }
  0x70   : > { %2461 = vmatprep.subr.bf16.mxu0 %v2699_v2  ;;  %2483 = vmatprep.subr.bf16.mxu1 %v2699_v2  ;;  %v1190_v11 = vor.u32 %v1188_v6, %v1186_v63 }
  0x71   : > { %v1198_v23 = vor.u32 %v1196_v18, %v1194_v12 }
  0x72   : > { %v1195_v17 = vsel %vm549_vm3, %v1190_v11, %v1194_v12 }
  0x73   : > { %v1203_v27 = vsel %vm549_vm3, %v1198_v23, %v1202_v24 }
  0x75   : > { %2380 = vmatmul.mubr.msk.bf16.gmra.mrb[44].mxu0 %vm307_vm2, %v2580_v14  ;;  %2402 = vmatmul.mubr.msk.bf16.gmra.mrb[44].mxu1 %vm307_vm2, %v1012_v15  ;;  %v1365_v14 = vor.u32 %v1363_v9, %v1361_v3  ;;  %v1369_v15 = vrot.slane %v1367_v10, 1 }
  0x76   : > { %2383 = vmatprep.mubr.msk.bf16.mxu0 %vm2700_vm1, %v2699_v2  ;;  %2405 = vmatprep.mubr.msk.bf16.mxu1 %vm2700_vm1, %v2699_v2 }
  0x77   : > { %v1370_v20 = vsel %vm549_vm3, %v1365_v14, %v1369_v15 }
  0x7d   : > { %2384 = vmatmul.mubr.msk.bf16.gmra.mrb[48].mxu0 %vm307_vm2, %v2582_v21  ;;  %2406 = vmatmul.mubr.msk.bf16.gmra.mrb[48].mxu1 %vm307_vm2, %v1020_v22  ;;  %v1371_v21 = vshrl.u32 %v2594_v4, 16  ;;  %v1375_v22 = vshll.u32 %v2596_v16, 16 }
  0x7e   : > { %2387 = vmatprep.mubr.msk.bf16.mxu0 %vm2700_vm1, %v2699_v2  ;;  %2409 = vmatprep.mubr.msk.bf16.mxu1 %vm2700_vm1, %v2699_v2 }
  0x7f   : > { %v1373_v25 = vor.u32 %v1371_v21, %v1369_v15  ;;  %v1377_v26 = vrot.slane %v1375_v22, 1 }
  0x85   : > { %2388 = vmatmul.mubr.msk.bf16.gmra.mrb[52].mxu0 %vm307_vm2, %v2584_v29  ;;  %2410 = vmatmul.mubr.msk.bf16.gmra.mrb[52].mxu1 %vm307_vm2, %v1028_v31  ;;  %v1378_v29 = vsel %vm549_vm3, %v1373_v25, %v1377_v26  ;;  %v1379_v31 = vshrl.u32 %v2596_v16, 16 }
  0x86   : > { %2391 = vmatprep.mubr.msk.bf16.mxu0 %vm2700_vm1, %v2699_v2  ;;  %2413 = vmatprep.mubr.msk.bf16.mxu1 %vm2700_vm1, %v2699_v2 }
  0x87   : > { %v1381_v35 = vor.u32 %v1379_v31, %v1377_v26 }
  0x8d   : > { %2392 = vmatmul.mubr.msk.bf16.gmra.mrb[56].mxu0 %vm307_vm2, %v2586_v38  ;;  %2414 = vmatmul.mubr.msk.bf16.gmra.mrb[56].mxu1 %vm307_vm2, %v1031_v39  ;;  %v1489_v38 = vrot.slane %v2967_v34, 1 }
  0x8e   : > { %2419 = vmatprep.mubr.msk.bf16.mxu0 %vm2700_vm1, %v2699_v2  ;;  %2441 = vmatprep.mubr.msk.bf16.mxu1 %vm2700_vm1, %v2699_v2 }
  0x8f   : > { %v1490_v39 = vsel %vm1487_vm4, %v1488_v37, %v1489_v38  ;;  %v1492_v34 = vsel %vm1487_vm4, %v1489_v38, %v1491_v28 }
  0x95   : > { %2420 = vmatmul.mubr.msk.bf16.vlgmr.msra.gmra.mrb[60].mxu0 %vm307_vm2, %v1179_v54  ;;  %2442 = vmatmul.mubr.msk.bf16.vlgmr.msra.gmra.mrb[60].mxu1 %vm307_vm2, %v1354_v58 }
  0x96   : > { %2462 = vmatpush3.bf16.msra.mxu0 %v1513_v57  ;;  %2484 = vmatpush3.bf16.msra.mxu1 %v1723_v61 }
  0x97   : > { %2423 = vmatprep.mubr.msk.bf16.mxu0 %vm2700_vm1, %v2699_v2  ;;  %2445 = vmatprep.mubr.msk.bf16.mxu1 %vm2700_vm1, %v2699_v2 }
  0x9d   : > { %2424 = vmatmul.mubr.msk.bf16.gmra.mrb[64].mxu0 %vm307_vm2, %v1187_v5  ;;  %2446 = vmatmul.mubr.msk.bf16.gmra.mrb[64].mxu1 %vm307_vm2, %v1362_v8 }
  0x9e   : > { %2427 = vmatprep.mubr.msk.bf16.mxu0 %vm2700_vm1, %v2699_v2  ;;  %2449 = vmatprep.mubr.msk.bf16.mxu1 %vm2700_vm1, %v2699_v2 }
  0xa5   : > { %2428 = vmatmul.mubr.msk.bf16.gmra.mrb[68].mxu0 %vm307_vm2, %v1195_v17  ;;  %2450 = vmatmul.mubr.msk.bf16.gmra.mrb[68].mxu1 %vm307_vm2, %v1370_v20 }
  0xa6   : > { %2431 = vmatprep.mubr.msk.bf16.mxu0 %vm2700_vm1, %v2699_v2  ;;  %2453 = vmatprep.mubr.msk.bf16.mxu1 %vm2700_vm1, %v2699_v2 }
  0xad   : > { %2432 = vmatmul.mubr.msk.bf16.gmra.mrb[72].mxu0 %vm307_vm2, %v1203_v27  ;;  %2454 = vmatmul.mubr.msk.bf16.gmra.mrb[72].mxu1 %vm307_vm2, %v1378_v29 }
  0xae   : > { %2435 = vmatprep.mubr.msk.bf16.mxu0 %vm2700_vm1, %v2699_v2  ;;  %2457 = vmatprep.mubr.msk.bf16.mxu1 %vm2700_vm1, %v2699_v2 }
  0xb5   : > { %2436 = vmatmul.mubr.msk.bf16.gmra.mrb[76].mxu0 %vm307_vm2, %v1206_v33  ;;  %2458 = vmatmul.mubr.msk.bf16.gmra.mrb[76].mxu1 %vm307_vm2, %v1381_v35 }
  0xb6   : > { %2463 = vmatprep.mubr.msk.bf16.mxu0 %vm2700_vm1, %v2699_v2  ;;  %2485 = vmatprep.mubr.msk.bf16.mxu1 %vm2700_vm1, %v2699_v2 }
  0xbd   : > { %2464 = vmatmul.mubr.msk.bf16.vlgmr.msra.gmra.mrb[80].mxu0 %vm307_vm2, %v1490_v39  ;;  %2486 = vmatmul.mubr.msk.bf16.vlgmr.msra.gmra.mrb[80].mxu1 %vm307_vm2, %v2598_v40 }
  0xbe   : > { %2467 = vmatprep.mubr.msk.bf16.mxu0 %vm2700_vm1, %v2699_v2  ;;  %2489 = vmatprep.mubr.msk.bf16.mxu1 %vm2700_vm1, %v2699_v2 }
  0xc5   : > { %2468 = vmatmul.mubr.msk.bf16.gmra.mrb[84].mxu0 %vm307_vm2, %v1492_v34  ;;  %2490 = vmatmul.mubr.msk.bf16.gmra.mrb[84].mxu1 %vm307_vm2, %v2599_v41 }
  0xc6   : > { %2471 = vmatprep.mubr.msk.bf16.mxu0 %vm2700_vm1, %v2699_v2  ;;  %2493 = vmatprep.mubr.msk.bf16.mxu1 %vm2700_vm1, %v2699_v2 }
  0xcd   : > { %2472 = vmatmul.mubr.msk.bf16.gmra.mrb[88].mxu0 %vm307_vm2, %v1494_v43  ;;  %2494 = vmatmul.mubr.msk.bf16.gmra.mrb[88].mxu1 %vm307_vm2, %v2600_v44 }
  0xce   : > { %2475 = vmatprep.mubr.msk.bf16.mxu0 %vm2700_vm1, %v2699_v2  ;;  %2497 = vmatprep.mubr.msk.bf16.mxu1 %vm2700_vm1, %v2699_v2 }
  0xd5   : > { %2476 = vmatmul.mubr.msk.bf16.gmra.mrb[92].mxu0 %vm307_vm2, %v1496_v46  ;;  %2498 = vmatmul.mubr.msk.bf16.gmra.mrb[92].mxu1 %vm307_vm2, %v2601_v47 }
  0xd6   : > { %2479 = vmatprep.mubr.msk.bf16.mxu0 %vm2700_vm1, %v2699_v2  ;;  %2501 = vmatprep.mubr.msk.bf16.mxu1 %vm2700_vm1, %v2699_v2 }
  0xdd   : > { %2480 = vmatmul.mubr.msk.bf16.gmra.mrb[96].mxu0 %vm307_vm2, %v1495_v45  ;;  %2502 = vmatmul.mubr.msk.bf16.gmra.mrb[96].mxu1 %vm307_vm2, %v2602_v48 }
  0xf0   : > { %v361_v49 = vpop.f32.mrb[0].mxu0  ;;  %v474_v50 = vpop.f32.mrb[0].mxu1 }
  0xf1   : > { %v2289_v51 = vpop.f32.mrb[1].mxu0  ;;  %v475_v52 = vadd.f32 %v474_v50, %v361_v49  ;;  %v2311_v53 = vpop.f32.mrb[1].mxu1 }
  0xf2   : > { %v364_v54 = vpop.f32.mrb[2].mxu0  ;;  %v477_v55 = vpop.f32.mrb[2].mxu1 }
  0xf3   : > { %v2290_v56 = vpop.f32.mrb[3].mxu0  ;;  %v478_v57 = vadd.f32 %v477_v55, %v364_v54  ;;  %v2312_v58 = vpop.f32.mrb[3].mxu1 }
  0xf8   : > { %v369_v59 = vpop.f32.mrb[4].mxu0  ;;  %v482_v60 = vpop.f32.mrb[4].mxu1 }
  0xf9   : > { %v2293_v61 = vpop.f32.mrb[5].mxu0  ;;  %v483_v62 = vadd.f32 %v482_v60, %v369_v59  ;;  %v2315_v2 = vpop.f32.mrb[5].mxu1 }
  0xfa   : > { %v372_v63 = vpop.f32.mrb[6].mxu0  ;;  %v485_v0 = vpop.f32.mrb[6].mxu1 }
  0xfb   : > { %v2294_v1 = vpop.f32.mrb[7].mxu0  ;;  %v486_v3 = vadd.f32 %v485_v0, %v372_v63  ;;  %v2316_v4 = vpop.f32.mrb[7].mxu1 }
 0x100   : > { %v377_v5 = vpop.f32.mrb[8].mxu0  ;;  %v490_v6 = vpop.f32.mrb[8].mxu1 }
 0x101   : > { %v2297_v7 = vpop.f32.mrb[9].mxu0  ;;  %v491_v8 = vadd.f32 %v490_v6, %v377_v5  ;;  %v2319_v9 = vpop.f32.mrb[9].mxu1 }
 0x102   : > { %v380_v10 = vpop.f32.mrb[10].mxu0  ;;  %v493_v11 = vpop.f32.mrb[10].mxu1 }
 0x103   : > { %v2298_v12 = vpop.f32.mrb[11].mxu0  ;;  %v494_v13 = vadd.f32 %v493_v11, %v380_v10  ;;  %v2320_v14 = vpop.f32.mrb[11].mxu1 }
 0x108   : > { %v385_v15 = vpop.f32.mrb[12].mxu0  ;;  %v498_v16 = vpop.f32.mrb[12].mxu1 }
 0x109   : > { %v2301_v17 = vpop.f32.mrb[13].mxu0  ;;  %v499_v18 = vadd.f32 %v498_v16, %v385_v15  ;;  %v2323_v19 = vpop.f32.mrb[13].mxu1 }
 0x10a   : > { %v388_v20 = vpop.f32.mrb[14].mxu0  ;;  %v501_v21 = vpop.f32.mrb[14].mxu1 }
 0x10b   : > { %v2302_v22 = vpop.f32.mrb[15].mxu0  ;;  %v502_v23 = vadd.f32 %v501_v21, %v388_v20  ;;  %v2324_v24 = vpop.f32.mrb[15].mxu1 }
 0x110   : > { %v393_v25 = vpop.f32.mrb[16].mxu0  ;;  %v506_v26 = vpop.f32.mrb[16].mxu1 }
 0x111   : > { %v2305_v27 = vpop.f32.mrb[17].mxu0  ;;  %v507_v29 = vadd.f32 %v506_v26, %v393_v25  ;;  %v2327_v31 = vpop.f32.mrb[17].mxu1 }
 0x112   : > { %v396_v30 = vpop.f32.mrb[18].mxu0  ;;  %v509_v33 = vpop.f32.mrb[18].mxu1 }
 0x113   : > { %v2306_v32 = vpop.f32.mrb[19].mxu0  ;;  %v2328_v35 = vpop.f32.mrb[19].mxu1 }
 0x118   : > { %v641_v36 = vpop.f32.mrb[20].mxu0  ;;  %v775_v39 = vpop.f32.mrb[20].mxu1 }
 0x119   : > { %v679_v37 = vadd.f32 %v641_v36, %v475_v52  ;;  %v2333_v38 = vpop.f32.mrb[21].mxu0  ;;  %v2355_v28 = vpop.f32.mrb[21].mxu1 }
 0x11a   : > { %v644_v40 = vpop.f32.mrb[22].mxu0  ;;  %v778_v43 = vpop.f32.mrb[22].mxu1 }
 0x11b   : > { %v813_v34 = vadd.f32 %v775_v39, %v679_v37  ;;  %v680_v41 = vadd.f32 %v644_v40, %v478_v57  ;;  %v2334_v42 = vpop.f32.mrb[23].mxu0  ;;  %v2356_v44 = vpop.f32.mrb[23].mxu1 }
 0x11d   : > { %v814_v45 = vadd.f32 %v778_v43, %v680_v41 }
 0x120   : > { %v649_v46 = vpop.f32.mrb[24].mxu0  ;;  %v783_v49 = vpop.f32.mrb[24].mxu1 }
 0x121   : > { %v681_v47 = vadd.f32 %v649_v46, %v483_v62  ;;  %v2337_v48 = vpop.f32.mrb[25].mxu0  ;;  %v2359_v51 = vpop.f32.mrb[25].mxu1 }
 0x122   : > { %v652_v50 = vpop.f32.mrb[26].mxu0  ;;  %v786_v52 = vpop.f32.mrb[26].mxu1 }
 0x123   : > { %v815_v53 = vadd.f32 %v783_v49, %v681_v47  ;;  %v682_v54 = vadd.f32 %v652_v50, %v486_v3  ;;  %v2338_v55 = vpop.f32.mrb[27].mxu0  ;;  %v2360_v56 = vpop.f32.mrb[27].mxu1 }
 0x125   : > { %v816_v58 = vadd.f32 %v786_v52, %v682_v54 }
 0x128   : > { %v657_v59 = vpop.f32.mrb[28].mxu0  ;;  %v791_v57 = vpop.f32.mrb[28].mxu1 }
 0x129   : > { %v683_v60 = vadd.f32 %v657_v59, %v491_v8  ;;  %v2341_v61 = vpop.f32.mrb[29].mxu0  ;;  %v2363_v63 = vpop.f32.mrb[29].mxu1 }
 0x12a   : > { %v660_v2 = vpop.f32.mrb[30].mxu0  ;;  %v794_v62 = vpop.f32.mrb[30].mxu1 }
 0x12b   : > { %v817_v0 = vadd.f32 %v791_v57, %v683_v60  ;;  %v684_v1 = vadd.f32 %v660_v2, %v494_v13  ;;  %v2342_v4 = vpop.f32.mrb[31].mxu0  ;;  %v2364_v5 = vpop.f32.mrb[31].mxu1 }
 0x12d   : > { %v818_v6 = vadd.f32 %v794_v62, %v684_v1 }
 0x130   : > { %v665_v7 = vpop.f32.mrb[32].mxu0  ;;  %v799_v3 = vpop.f32.mrb[32].mxu1 }
 0x131   : > { %v685_v9 = vadd.f32 %v665_v7, %v499_v18  ;;  %v2345_v10 = vpop.f32.mrb[33].mxu0  ;;  %v2367_v12 = vpop.f32.mrb[33].mxu1 }
 0x132   : > { %v668_v11 = vpop.f32.mrb[34].mxu0  ;;  %v802_v8 = vpop.f32.mrb[34].mxu1 }
 0x133   : > { %v819_v14 = vadd.f32 %v799_v3, %v685_v9  ;;  %v686_v15 = vadd.f32 %v668_v11, %v502_v23  ;;  %v2346_v16 = vpop.f32.mrb[35].mxu0  ;;  %v2368_v17 = vpop.f32.mrb[35].mxu1 }
 0x135   : > { %v820_v19 = vadd.f32 %v802_v8, %v686_v15 }
 0x138   : > { %v673_v20 = vpop.f32.mrb[36].mxu0  ;;  %v807_v13 = vpop.f32.mrb[36].mxu1 }
 0x139   : > { %v687_v21 = vadd.f32 %v673_v20, %v507_v29  ;;  %v2349_v22 = vpop.f32.mrb[37].mxu0  ;;  %v2371_v25 = vpop.f32.mrb[37].mxu1 }
 0x13a   : > { %v676_v24 = vpop.f32.mrb[38].mxu0  ;;  %v810_v30 = vpop.f32.mrb[38].mxu1 }
 0x13b   : > { %v821_v26 = vadd.f32 %v807_v13, %v687_v21  ;;  %v2350_v27 = vpop.f32.mrb[39].mxu0  ;;  %v2372_v18 = vpop.f32.mrb[39].mxu1 }
 0x140   : > { %v909_v31 = vpop.f32.mrb[40].mxu0  ;;  %v1084_v35 = vpop.f32.mrb[40].mxu1 }
 0x141   : > { %v947_v32 = vadd.f32 %v909_v31, %v813_v34  ;;  %v2377_v33 = vpop.f32.mrb[41].mxu0  ;;  %v2399_v23 = vpop.f32.mrb[41].mxu1 }
 0x142   : > { %v912_v36 = vpop.f32.mrb[42].mxu0  ;;  %v1087_v40 = vpop.f32.mrb[42].mxu1 }
 0x143   : > { %v1122_v37 = vadd.f32 %v1084_v35, %v947_v32  ;;  %v948_v38 = vadd.f32 %v912_v36, %v814_v45  ;;  %v2378_v39 = vpop.f32.mrb[43].mxu0  ;;  %v2400_v28 = vpop.f32.mrb[43].mxu1 }
 0x145   : > { %v1123_v29 = vadd.f32 %v1087_v40, %v948_v38 }
 0x148   : > { %v917_v41 = vpop.f32.mrb[44].mxu0  ;;  %v1092_v44 = vpop.f32.mrb[44].mxu1 }
 0x149   : > { %v949_v42 = vadd.f32 %v917_v41, %v815_v53  ;;  %v2381_v43 = vpop.f32.mrb[45].mxu0  ;;  %v2403_v47 = vpop.f32.mrb[45].mxu1 }
 0x14a   : > { %v920_v46 = vpop.f32.mrb[46].mxu0  ;;  %v1095_v34 = vpop.f32.mrb[46].mxu1 }
 0x14b   : > { %v1124_v48 = vadd.f32 %v1092_v44, %v949_v42  ;;  %v950_v49 = vadd.f32 %v920_v46, %v816_v58  ;;  %v2382_v50 = vpop.f32.mrb[47].mxu0  ;;  %v2404_v51 = vpop.f32.mrb[47].mxu1 }
 0x14d   : > { %v1125_v54 = vadd.f32 %v1095_v34, %v950_v49 }
 0x150   : > { %v925_v55 = vpop.f32.mrb[48].mxu0  ;;  %v1100_v45 = vpop.f32.mrb[48].mxu1 }
 0x151   : > { %v951_v52 = vadd.f32 %v925_v55, %v817_v0  ;;  %v2385_v56 = vpop.f32.mrb[49].mxu0  ;;  %v2407_v60 = vpop.f32.mrb[49].mxu1 }
 0x152   : > { %v928_v59 = vpop.f32.mrb[50].mxu0  ;;  %v1103_v53 = vpop.f32.mrb[50].mxu1 }
 0x153   : > { %v1126_v61 = vadd.f32 %v1100_v45, %v951_v52  ;;  %v952_v57 = vadd.f32 %v928_v59, %v818_v6  ;;  %v2386_v2 = vpop.f32.mrb[51].mxu0  ;;  %v2408_v63 = vpop.f32.mrb[51].mxu1 }
 0x155   : > { %v1127_v1 = vadd.f32 %v1103_v53, %v952_v57 }
 0x158   : > { %v933_v4 = vpop.f32.mrb[52].mxu0  ;;  %v1108_v58 = vpop.f32.mrb[52].mxu1 }
 0x159   : > { %v953_v62 = vadd.f32 %v933_v4, %v819_v14  ;;  %v2389_v5 = vpop.f32.mrb[53].mxu0  ;;  %v2411_v9 = vpop.f32.mrb[53].mxu1 }
 0x15a   : > { %v936_v7 = vpop.f32.mrb[54].mxu0  ;;  %v1111_v0 = vpop.f32.mrb[54].mxu1 }
 0x15b   : > { %v1128_v10 = vadd.f32 %v1108_v58, %v953_v62  ;;  %v954_v3 = vadd.f32 %v936_v7, %v820_v19  ;;  %v2390_v11 = vpop.f32.mrb[55].mxu0  ;;  %v2412_v12 = vpop.f32.mrb[55].mxu1 }
 0x15d   : > { %v1129_v15 = vadd.f32 %v1111_v0, %v954_v3 }
 0x160   : > { %v941_v16 = vpop.f32.mrb[56].mxu0  ;;  %v1116_v6 = vpop.f32.mrb[56].mxu1 }
 0x161   : > { %v955_v8 = vadd.f32 %v941_v16, %v821_v26  ;;  %v2393_v17 = vpop.f32.mrb[57].mxu0  ;;  %v2415_v21 = vpop.f32.mrb[57].mxu1 }
 0x162   : > { %v944_v20 = vpop.f32.mrb[58].mxu0  ;;  %v1119_v24 = vpop.f32.mrb[58].mxu1 }
 0x163   : > { %v1130_v22 = vadd.f32 %v1116_v6, %v955_v8  ;;  %v2394_v13 = vpop.f32.mrb[59].mxu0  ;;  %v2416_v14 = vpop.f32.mrb[59].mxu1 }
 0x168   : > { %v1259_v25 = vpop.f32.mrb[60].mxu0  ;;  %v1434_v18 = vpop.f32.mrb[60].mxu1 }
 0x169   : > { %v1297_v27 = vadd.f32 %v1259_v25, %v1122_v37  ;;  %v2421_v30 = vpop.f32.mrb[61].mxu0  ;;  %v2443_v19 = vpop.f32.mrb[61].mxu1 }
 0x16a   : > { %v1262_v31 = vpop.f32.mrb[62].mxu0  ;;  %v1437_v36 = vpop.f32.mrb[62].mxu1 }
 0x16b   : > { %v1472_v32 = vadd.f32 %v1434_v18, %v1297_v27  ;;  %v1298_v33 = vadd.f32 %v1262_v31, %v1123_v29  ;;  %v2422_v35 = vpop.f32.mrb[63].mxu0  ;;  %v2444_v23 = vpop.f32.mrb[63].mxu1 }
 0x16d   : > { %v1473_v26 = vadd.f32 %v1437_v36, %v1298_v33 }
 0x170   : > { %v1267_v38 = vpop.f32.mrb[64].mxu0  ;;  %v1442_v28 = vpop.f32.mrb[64].mxu1 }
 0x171   : > { %v1299_v39 = vadd.f32 %v1267_v38, %v1124_v48  ;;  %v2425_v40 = vpop.f32.mrb[65].mxu0  ;;  %v2447_v42 = vpop.f32.mrb[65].mxu1 }
 0x172   : > { %v1270_v41 = vpop.f32.mrb[66].mxu0  ;;  %v1445_v46 = vpop.f32.mrb[66].mxu1 }
 0x173   : > { %v3086_v43 = vadd.f32 %v1442_v28, %v1299_v39  ;;  %v1300_v44 = vadd.f32 %v1270_v41, %v1125_v54  ;;  %v2426_v37 = vpop.f32.mrb[67].mxu0  ;;  %v2448_v47 = vpop.f32.mrb[67].mxu1 }
 0x175   : > { %v3088_v49 = vadd.f32 %v1445_v46, %v1300_v44 }
 0x178   : > { %v1275_v50 = vpop.f32.mrb[68].mxu0  ;;  %v1450_v51 = vpop.f32.mrb[68].mxu1 }
 0x179   : > { %v1301_v29 = vadd.f32 %v1275_v50, %v1126_v61  ;;  %v2429_v34 = vpop.f32.mrb[69].mxu0  ;;  %v2451_v52 = vpop.f32.mrb[69].mxu1 }
 0x17a   : > { %v1278_v55 = vpop.f32.mrb[70].mxu0  ;;  %v1453_v59 = vpop.f32.mrb[70].mxu1 }
 0x17b   : > { %v3090_v56 = vadd.f32 %v1450_v51, %v1301_v29  ;;  %v1302_v48 = vadd.f32 %v1278_v55, %v1127_v1  ;;  %v2430_v45 = vpop.f32.mrb[71].mxu0  ;;  %v2452_v60 = vpop.f32.mrb[71].mxu1 }
 0x17d   : > { %v3092_v57 = vadd.f32 %v1453_v59, %v1302_v48 }
 0x180   : > { %v1283_v54 = vpop.f32.mrb[72].mxu0  ;;  %v1458_v63 = vpop.f32.mrb[72].mxu1 }
 0x181   : > { %v1303_v2 = vadd.f32 %v1283_v54, %v1128_v10  ;;  %v2433_v53 = vpop.f32.mrb[73].mxu0  ;;  %v2455_v62 = vpop.f32.mrb[73].mxu1 }
 0x182   : > { %v1286_v4 = vpop.f32.mrb[74].mxu0  ;;  %v1461_v7 = vpop.f32.mrb[74].mxu1 }
 0x183   : > { %v3094_v5 = vadd.f32 %v1458_v63, %v1303_v2  ;;  %v1304_v61 = vadd.f32 %v1286_v4, %v1129_v15  ;;  %v2434_v58 = vpop.f32.mrb[75].mxu0  ;;  %v2456_v9 = vpop.f32.mrb[75].mxu1  ;;  %v3106_v15 = vld [vmem:[%s3245_s4] ss:$0 sm:$0xff] }
 0x185   : > { %v3096_v3 = vadd.f32 %v1461_v7, %v1304_v61 }
 0x188   : > { %v1291_v1 = vpop.f32.mrb[76].mxu0  ;;  %v1466_v12 = vpop.f32.mrb[76].mxu1 }
 0x189   : > { %v1305_v11 = vadd.f32 %v1291_v1, %v1130_v22  ;;  %v2437_v0 = vpop.f32.mrb[77].mxu0  ;;  %v2459_v8 = vpop.f32.mrb[77].mxu1  ;;  %v3111_v22 = vld [vmem:[%s3243_s2] ss:$0 sm:$0xff] }
 0x18a   : > { %v1294_v16 = vpop.f32.mrb[78].mxu0  ;;  %v1469_v6 = vpop.f32.mrb[78].mxu1 }
 0x18b   : > { %v3098_v10 = vadd.f32 %v1466_v12, %v1305_v11  ;;  %v2438_v17 = vpop.f32.mrb[79].mxu0  ;;  %v2460_v20 = vpop.f32.mrb[79].mxu1 }
 0x190   : > { %v1549_v21 = vpop.f32.mrb[80].mxu0  ;;  %v1759_v14 = vpop.f32.mrb[80].mxu1 }
 0x191   : > { %v1587_v13 = vadd.f32 %v1549_v21, %v1472_v32  ;;  %v2465_v24 = vpop.f32.mrb[81].mxu0  ;;  %v1760_v25 = vadd.f32 %v3106_v15, %v1759_v14  ;;  %v2487_v30 = vpop.f32.mrb[81].mxu1 }
 0x192   : > { %v1552_v27 = vpop.f32.mrb[82].mxu0  ;;  %v1762_v33 = vpop.f32.mrb[82].mxu1 }
 0x193   : > { %v1603_v18 = vadd.f32 %v3111_v22, %v1587_v13  ;;  %v1588_v31 = vadd.f32 %v1552_v27, %v1473_v26  ;;  %v2466_v19 = vpop.f32.mrb[83].mxu0  ;;  %v1763_v35 = vadd.f32 %v3106_v15, %v1762_v33  ;;  %v2488_v36 = vpop.f32.mrb[83].mxu1 }
 0x195   : > { %v1604_v23 = vadd.f32 %v3111_v22, %v1588_v31  ;;  %v2202_v38 = vpack.c.bf16 %v1763_v35, %v1760_v25  ;;  %v1612_v39 = vmax.f32 %v1603_v18, 0.0 }
 0x197   : > { %v1613_v32 = vmax.f32 %v1604_v23, 0.0  ;;  %2203 = vst [vmem:[%s3118_s10] sm:$0xff] %v2202_v38  }
 0x198   : > { %v1557_v40 = vpop.f32.mrb[84].mxu0  ;;  %v1767_v26 = vpop.f32.mrb[84].mxu1 }
 0x199   : > { %v2182_v28 = vpack.c.bf16 %v1613_v32, %v1612_v39  ;;  %v1589_v41 = vadd.f32 %v1557_v40, %v3086_v43  ;;  %v2469_v42 = vpop.f32.mrb[85].mxu0  ;;  %v1768_v44 = vadd.f32 %v3106_v15, %v1767_v26  ;;  %v2491_v46 = vpop.f32.mrb[85].mxu1 }
 0x19a   : > { %v1560_v37 = vpop.f32.mrb[86].mxu0  ;;  %v1770_v34 = vpop.f32.mrb[86].mxu1 }
 0x19b   : > { %2183 = vst [vmem:[%s3123_s11] sm:$0xff] %v2182_v28   ;;  %v1605_v47 = vadd.f32 %v3111_v22, %v1589_v41  ;;  %v1590_v50 = vadd.f32 %v1560_v37, %v3088_v49  ;;  %v2470_v29 = vpop.f32.mrb[87].mxu0  ;;  %v1771_v43 = vadd.f32 %v3106_v15, %v1770_v34  ;;  %v2492_v51 = vpop.f32.mrb[87].mxu1 }
 0x19d   : > { %v1606_v55 = vadd.f32 %v3111_v22, %v1590_v50  ;;  %v2207_v52 = vpack.c.bf16 %v1771_v43, %v1768_v44  ;;  %v1614_v48 = vmax.f32 %v1605_v47, 0.0 }
 0x19f   : > { %v1615_v45 = vmax.f32 %v1606_v55, 0.0  ;;  %2222 = vst [vmem:[%s3118_s10 + $0x8] sm:$0xff] %v2207_v52  }
 0x1a0   : > { %v1565_v59 = vpop.f32.mrb[88].mxu0  ;;  %v1775_v53 = vpop.f32.mrb[88].mxu1 }
 0x1a1   : > { %v2187_v60 = vpack.c.bf16 %v1615_v45, %v1614_v48  ;;  %v1591_v54 = vadd.f32 %v1565_v59, %v3090_v56  ;;  %v2473_v2 = vpop.f32.mrb[89].mxu0  ;;  %v1776_v49 = vadd.f32 %v3106_v15, %v1775_v53  ;;  %v2495_v4 = vpop.f32.mrb[89].mxu1 }
 0x1a2   : > { %v1568_v63 = vpop.f32.mrb[90].mxu0  ;;  %v1778_v7 = vpop.f32.mrb[90].mxu1 }
 0x1a3   : > { %2219 = vst [vmem:[%s3123_s11 + $0x8] sm:$0xff] %v2187_v60   ;;  %v1607_v62 = vadd.f32 %v3111_v22, %v1591_v54  ;;  %v1592_v61 = vadd.f32 %v1568_v63, %v3092_v57  ;;  %v2474_v58 = vpop.f32.mrb[91].mxu0  ;;  %v1779_v9 = vadd.f32 %v3106_v15, %v1778_v7  ;;  %v2496_v1 = vpop.f32.mrb[91].mxu1 }
 0x1a5   : > { %v1608_v56 = vadd.f32 %v3111_v22, %v1592_v61  ;;  %v2212_v11 = vpack.c.bf16 %v1779_v9, %v1776_v49  ;;  %v1616_v0 = vmax.f32 %v1607_v62, 0.0 }
 0x1a7   : > { %v1617_v12 = vmax.f32 %v1608_v56, 0.0  ;;  %2223 = vst [vmem:[%s3118_s10 + $0x10] sm:$0xff] %v2212_v11  }
 0x1a8   : > { %v1573_v16 = vpop.f32.mrb[92].mxu0  ;;  %v1783_v20 = vpop.f32.mrb[92].mxu1 }
 0x1a9   : > { %v2192_v8 = vpack.c.bf16 %v1617_v12, %v1616_v0  ;;  %v1593_v17 = vadd.f32 %v1573_v16, %v3094_v5  ;;  %v2477_v6 = vpop.f32.mrb[93].mxu0  ;;  %v1784_v57 = vadd.f32 %v3106_v15, %v1783_v20  ;;  %v2499_v13 = vpop.f32.mrb[93].mxu1 }
 0x1aa   : > { %v1576_v21 = vpop.f32.mrb[94].mxu0  ;;  %v1786_v27 = vpop.f32.mrb[94].mxu1 }
 0x1ab   : > { %2220 = vst [vmem:[%s3123_s11 + $0x10] sm:$0xff] %v2192_v8   ;;  %v1609_v24 = vadd.f32 %v3111_v22, %v1593_v17  ;;  %v1594_v14 = vadd.f32 %v1576_v21, %v3096_v3  ;;  %v2478_v25 = vpop.f32.mrb[95].mxu0  ;;  %v1787_v30 = vadd.f32 %v3106_v15, %v1786_v27  ;;  %v2500_v18 = vpop.f32.mrb[95].mxu1 }
 0x1ad   : > { %v1610_v5 = vadd.f32 %v3111_v22, %v1594_v14  ;;  %v2217_v31 = vpack.c.bf16 %v1787_v30, %v1784_v57  ;;  %v1618_v19 = vmax.f32 %v1609_v24, 0.0 }
 0x1af   : > { %v1619_v33 = vmax.f32 %v1610_v5, 0.0  ;;  %2224 = vst [vmem:[%s3118_s10 + $0x18] sm:$0xff] %v2217_v31  }
 0x1b0   : > { %v1581_v35 = vpop.f32.mrb[96].mxu0  ;;  %v1791_v38 = vpop.f32.mrb[96].mxu1 }
 0x1b1   : > { %v2197_v36 = vpack.c.bf16 %v1619_v33, %v1618_v19  ;;  %v1595_v23 = vadd.f32 %v1581_v35, %v3098_v10  ;;  %v2481_v3 = vpop.f32.mrb[97].mxu0  ;;  %v1792_v39 = vadd.f32 %v3106_v15, %v1791_v38  ;;  %v2503_v40 = vpop.f32.mrb[97].mxu1 }
 0x1b2   : > { %v1584_v32 = vpop.f32.mrb[98].mxu0  ;;  %v1794_v42 = vpop.f32.mrb[98].mxu1 }
 0x1b3   : > { %2221 = vst [vmem:[%s3123_s11 + $0x18] sm:$0xff] %v2197_v36   ;;  %v1611_v28 = vadd.f32 %v3111_v22, %v1595_v23  ;;  %v2482_v41 = vpop.f32.mrb[99].mxu0  ;;  %v2178_v10 = vpack.c.bf16 %v1792_v39, %v1792_v39  ;;  %v2504_v26 = vpop.f32.mrb[99].mxu1 }
 0x1b5   : > { %v1620_v15 = vmax.f32 %v1611_v28, 0.0  ;;  %1842 = vst [vmem:[%s3118_s10 + $0x20] sm:$0xf] %v2178_v10 }
 0x1b7   : > { %v2169_v22 = vpack.c.bf16 %v1620_v15, %v1620_v15 }
 0x1b8   : > { %2616 = shalt.err (!%p2613_p3)
}
 0x1b9   : > { %s2617_s10 = scalar_lea.hbm %s3159_s16, 576  ;;  %s2621_s17 = scalar_lea.hbm %s3247_s6, 1152 }
 0x1ba   : > { %p2618_p4 = scmp.ne.s32.totalorder %s3159_s16, %s2617_s10  ;;  %p2622_p9 = scmp.lt.u32.totalorder %s3159_s16, %s3247_s6 }
 0x1bb   : > { %p2623_p10 = scmp.lt.u32.totalorder %s2621_s17, %s2617_s10  ;;  %p2625_p12 = scmp.lt.u32.totalorder %s2617_s10, %s3159_s16 }
 0x1bc   : > { %p2619_p7 = pnand %p2618_p4, %p2778_p5 }
 0x1bd   : > { %p2624_p11 = por %p2623_p10, %p2622_p9 }
 0x1be   : > { %p2620_p8 = pneg %p2619_p7 }
 0x1bf   : > { %p2626_p13 = por %p2625_p12, %p2624_p11 }
 0x1c1   : > { %p2627_p0 = pnand %p2626_p13, %p2620_p8 }
 0x1c3   : > { %2630 = shalt.err (!%p2627_p0)
}
 0x1c4   : > { %s2702_s28 = smov 64   ;;  %s2703_s9 = smov 4   ;;  %1666 = vst [vmem:[%s3123_s11 + $0x20] sm:$0xf] %v2169_v22 }
 0x1c5   : > { %2510 = dma.vmem_to_hbm [thread:$0]  (%p2778_p5), %s3150_s12, 576, %s3159_s16, %s1849_s26, %s2702_s28, %s2702_s28, %s2703_s9  }
 0x1c6   : > { %s1844_s14 = scalar_lea.sflag [#allocation3], %s3101_s19  ;;  %s2631_s10 = scalar_lea.vmem %s3167_s25, 576 }
 0x1c7   : > { %p2632_p1 = scmp.ne.s32.totalorder %s3167_s25, %s2631_s10  ;;  %s2704_s13 = smov [#allocation2]  }
 0x1c8   : > { %s2635_s15 = sshll.u32 %s2704_s13, 4  ;;  %s2636_s15 = int_to_ptr.vmem [resolvable:$false] %s2635_s15 }
 0x1c9   : > { %p2633_p2 = pnand %p2632_p1, %p2778_p5  ;;  %s2637_s17 = scalar_lea.vmem %s2636_s15, 1152 }
 0x1ca   : > { %p2638_p4 = scmp.lt.s32.totalorder %s3167_s25, %s2636_s15  ;;  %p2639_p7 = scmp.lt.s32.totalorder %s2637_s17, %s2631_s10 }
 0x1cb   : > { %p2634_p3 = pneg %p2633_p2 }
 0x1cc   : > { %p2640_p8 = por %p2639_p7, %p2638_p4 }
 0x1ce   : > { %p2641_p9 = pnand %p2640_p8, %p2634_p3 }
 0x1d0   : > { %2644 = shalt.err (!%p2641_p9)
}
 0x1d1   : > { %s2645_s11 = scalar_lea.hbm %s3165_s20, 576  ;;  %s2649_s26 = scalar_lea.hbm %s3246_s5, 1152 }
 0x1d2   : > { %p2646_p10 = scmp.ne.s32.totalorder %s3165_s20, %s2645_s11  ;;  %p2650_p13 = scmp.lt.u32.totalorder %s3165_s20, %s3246_s5 }
 0x1d3   : > { %p2651_p0 = scmp.lt.u32.totalorder %s2649_s26, %s2645_s11  ;;  %p2653_p2 = scmp.lt.u32.totalorder %s2645_s11, %s3165_s20 }
 0x1d4   : > { %p2647_p11 = pnand %p2646_p10, %p2778_p5 }
 0x1d5   : > { %p2652_p1 = por %p2651_p0, %p2650_p13 }
 0x1d6   : > { %p2648_p12 = pneg %p2647_p11 }
 0x1d7   : > { %p2654_p3 = por %p2653_p2, %p2652_p1 }
 0x1d9   : > { %p2655_p4 = pnand %p2654_p3, %p2648_p12 }
 0x1db   : > { %2658 = shalt.err (!%p2655_p4)
}
 0x1dc   : > { %2509 = dma.vmem_to_hbm [thread:$0]  (%p2778_p5), %s3167_s25, 576, %s3165_s20, %s1844_s14, %s2702_s28, %s2702_s28, %s2703_s9  }
 0x1dd PF: > { %p2520_p7 = scmp.ge.s32.totalorder %s2697_s24, 2  ;;  %s1893_s10 = sand.u32 1, %s2685_s21  }
 0x1de   : > { %s1894_s13 = scalar_lea.sflag [#allocation3], %s1893_s10 }
 0x1df   : > { %p2514_p8 = pnand %p2520_p7, %p2782_p6 }
 0x1e1   : > { %2676 = dma.done.wait (!%p2514_p8), %s1894_s13, 576  }
 0x1e2   : > { %2678 = vsyncadd (!%p2514_p8), %s1894_s13, 4294966720  ;;  %s1903_s7 = scalar_lea.sflag [#allocation5], %s1893_s10 }
 0x1e3   : > { %2680 = dma.done.wait (!%p2514_p8), %s1903_s7, 576  }
 0x1e4   : > { %2682 = vsyncadd (!%p2514_p8), %s1903_s7, 4294966720  ;;  %p20_p5 = scmp.ge.s32.totalorder %s2765_s27, 4   ;;  %s3250_s21 = smov %s2689_s22 }
 0x1e5   : > { %s3251_s22 = smov %s2693_s23  ;;  %s3252_s23 = smov %s2776_s30 }
 0x1e6   : > { %s3253_s24 = smov %s2765_s27  ;;  %22 = sbr.rel (!%p20_p5) target bundleno = 5 (0x5), region = 103 }
 0x1ed   :  { %1908 = vsyncpa [#allocation3], 1 }
 0x1ee   :  { %1910 = vsyncpa [#allocation3 + $0x1], 1 }
 0x1ef   :  { %1911 = vsyncpa [#allocation5], 1 }
 0x1f0   :  { %1913 = vsyncpa [#allocation5 + $0x1], 1 }

</bundles_post_ra>
